<compile_context>
chip_gen: v7x
topology: tpu7x:2x2x1
jax: 0.10.0
libtpu: 0.0.40
codegen_flags: <defaults>
</compile_context>

<pallas_src>
import jax
import jax.numpy as jnp
from jax.experimental import pallas as pl
from jax.experimental.pallas import tpu as pltpu

HIDDEN = 500        # logical hidden width (PyTorch spec)
HIDDEN_PAD = 512    # lane-aligned hidden width used by the kernel (exact, zero-padded)


def _round_up(x, m):
    return (x + m - 1) // m * m


def _cdiv(a, b):
    return -(-a // b)


# ----------------------------------------------------------------------------
# Fused encoder kernel: x -> ReLU(xW1+b1) -> ReLU(hW2+b2) -> hW3+b3
# All operands are whole-array VMEM blocks; activations never leave VMEM.
# ----------------------------------------------------------------------------
def _encoder_kernel(x_ref, w1_ref, b1_ref, w2_ref, b2_ref, w3_ref, b3_ref, o_ref):
    def mm(a, w):
        # Weights are already stored in their matmul dtype (pre-cast once in
        # pad_params); only the activation is cast here.  Accumulate in f32.
        if w.dtype != jnp.float32:
            a = a.astype(w.dtype)
        return jnp.dot(a, w, preferred_element_type=jnp.float32)

    x = x_ref[...]                                            # (tb, d_in_p) f32
    h = jnp.maximum(mm(x, w1_ref[...]) + b1_ref[...], 0.0)    # (tb, 512) f32
    h = jnp.maximum(mm(h, w2_ref[...]) + b2_ref[...], 0.0)    # (tb, 512) f32
    y = mm(h, w3_ref[...]) + b3_ref[...]                      # (tb, F_pad) f32
    o_ref[...] = y.astype(o_ref.dtype)


def encoder_forward(params, x, *, feature_dim, block_b=512):
    """params = (w1,b1,w2,b2,w3,b3) as produced by pad_params; x: (B, d_in) f32.

    Returns (B, feature_dim) f32.
    """
    w1, b1, w2, b2, w3, b3 = params
    B, d_in = x.shape
    d_in_p = w1.shape[0]
    hp = w1.shape[1]
    f_pad = w3.shape[1]

    # ---- batch tiling -------------------------------------------------------
    pad_b = _round_up(B, 8)
    if pad_b >= 16:
        # Guarantee >= 2 batch tiles so dimension_semantics=("parallel",) can
        # actually shard across v7x's 2 TensorCores; cap at block_b.
        tb = min(block_b, _round_up(_cdiv(pad_b, 2), 8))
    else:
        tb = pad_b
    pad_b = _round_up(pad_b, tb)
    grid = (pad_b // tb,)

    # Pad batch rows and input columns (zeros -> numerically exact).
    if pad_b != B or d_in_p != d_in:
        x = jnp.pad(x, ((0, pad_b - B), (0, d_in_p - d_in)))

    # ---- advisory cost estimate --------------------------------------------
    flops = 2 * pad_b * (d_in_p * hp + hp * hp + hp * f_pad)
    weight_bytes = sum(int(a.size) * a.dtype.itemsize
                       for a in (w1, b1, w2, b2, w3, b3))
    bytes_accessed = 4 * pad_b * (d_in_p + f_pad) + weight_bytes

    out = pl.pallas_call(
        _encoder_kernel,
        out_shape=jax.ShapeDtypeStruct((pad_b, f_pad), jnp.float32),
        grid_spec=pltpu.PrefetchScalarGridSpec(
            num_scalar_prefetch=0,
            grid=grid,
            in_specs=[
                pl.BlockSpec((tb, d_in_p),   lambda i: (i, 0)),   # x (batch-tiled)
                pl.BlockSpec((d_in_p, hp),   lambda i: (0, 0)),   # W1 (resident)
                pl.BlockSpec((1, hp),        lambda i: (0, 0)),   # b1
                pl.BlockSpec((hp, hp),       lambda i: (0, 0)),   # W2
                pl.BlockSpec((1, hp),        lambda i: (0, 0)),   # b2
                pl.BlockSpec((hp, f_pad),    lambda i: (0, 0)),   # W3
                pl.BlockSpec((1, f_pad),     lambda i: (0, 0)),   # b3
            ],
            out_specs=pl.BlockSpec((tb, f_pad), lambda i: (i, 0)),  # lane-dense
        ),
        compiler_params=pltpu.CompilerParams(
            dimension_semantics=("parallel",),     # batch tiles independent
            vmem_limit_bytes=32 * 1024 * 1024,
        ),
        cost_estimate=pl.CostEstimate(
            flops=flops, transcendentals=0, bytes_accessed=bytes_accessed),
    )(x, w1, b1, w2, b2, w3, b3)
    return out[:B, :feature_dim]


# ----------------------------------------------------------------------------
# Parameter construction (mirrors the PyTorch module's init: default Linear
# init for layers 0 and 2 and the final bias, xavier_normal_ for the final W).
# ----------------------------------------------------------------------------
def init_encoder_params(key, input_dim, feature_dim):
    def linear_default(kw, kb, fan_in, fan_out):
        bound = 1.0 / (fan_in ** 0.5)
        w = jax.random.uniform(kw, (fan_in, fan_out), jnp.float32, -bound, bound)
        b = jax.random.uniform(kb, (1, fan_out), jnp.float32, -bound, bound)
        return w, b

    k = jax.random.split(key, 6)
    w1, b1 = linear_default(k[0], k[1], input_dim, HIDDEN)
    w2, b2 = linear_default(k[2], k[3], HIDDEN, HIDDEN)
    std = (2.0 / (HIDDEN + feature_dim)) ** 0.5                 # xavier_normal_
    w3 = std * jax.random.normal(k[4], (HIDDEN, feature_dim), dtype=jnp.float32)
    bound3 = 1.0 / (HIDDEN ** 0.5)
    b3 = jax.random.uniform(k[5], (1, feature_dim), jnp.float32, -bound3, bound3)
    return ((w1, b1), (w2, b2), (w3, b3))


def pad_params(real_params, matmul_dtype=jnp.float32):
    """Zero-pad d_in -> 128-mult, hidden 500 -> 512, F -> 128-mult (exact math).

    matmul_dtype=bf16 pre-casts the two hidden-layer weights ONCE (halves the
    weight DMA + uses the native bf16 MXU); the final W3 stays f32 for accuracy.
    """
    (w1, b1), (w2, b2), (w3, b3) = real_params
    d_in, H = w1.shape
    F = w3.shape[1]
    d_in_p = _round_up(d_in, 128)
    HP = HIDDEN_PAD
    FP = _round_up(F, 128)

    w1p = jnp.zeros((d_in_p, HP), jnp.float32).at[:d_in, :H].set(w1).astype(matmul_dtype)
    b1p = jnp.zeros((1, HP), jnp.float32).at[:, :H].set(b1)
    w2p = jnp.zeros((HP, HP), jnp.float32).at[:H, :H].set(w2).astype(matmul_dtype)
    b2p = jnp.zeros((1, HP), jnp.float32).at[:, :H].set(b2)
    w3p = jnp.zeros((HP, FP), jnp.float32).at[:H, :F].set(w3)       # kept f32
    b3p = jnp.zeros((1, FP), jnp.float32).at[:, :F].set(b3)
    return (w1p, b1p, w2p, b2p, w3p, b3p)


# ----------------------------------------------------------------------------
# Pure-JAX reference (unpadded f32), for correctness check
# ----------------------------------------------------------------------------
def encoder_forward_ref(real_params, x):
    (w1, b1), (w2, b2), (w3, b3) = real_params
    h = jnp.maximum(x @ w1 + b1, 0.0)
    h = jnp.maximum(h @ w2 + b2, 0.0)
    return h @ w3 + b3


# ----------------------------------------------------------------------------
if __name__ == "__main__":
    batch, input_dim, feature_dim = 8, 64, 32

    key = jax.random.PRNGKey(0)
    key, pk, xk = jax.random.split(key, 3)
    real_params = init_encoder_params(pk, input_dim, feature_dim)
    x = jax.random.normal(xk, (batch, input_dim), dtype=jnp.float32)
    y_ref = encoder_forward_ref(real_params, x)

    fwd = jax.jit(encoder_forward, static_argnames=("feature_dim", "block_b"))

    # Exact f32 path (matches the PyTorch module's fp32 semantics).
    params_f32 = pad_params(real_params, jnp.float32)
    y = fwd(params_f32, x, feature_dim=feature_dim)
    jax.block_until_ready(y)
    assert y.shape == (batch, feature_dim) and y.dtype == jnp.float32
    assert jnp.allclose(y, y_ref, atol=1e-4, rtol=1e-4), "f32 mismatch vs reference"

    # bf16 hidden-layer weights (review: v5e/v6e/v7x MXU rate + half weight DMA);
    # final layer stays f32, so the result remains close to the f32 reference.
    params_bf16 = pad_params(real_params, jnp.bfloat16)
    y2 = fwd(params_bf16, x, feature_dim=feature_dim)
    jax.block_until_ready(y2)
    assert y2.shape == (batch, feature_dim)
    assert jnp.allclose(y2, y_ref, atol=5e-2, rtol=5e-2), "bf16 mismatch vs reference"

    print("KERNEL_OK")
</pallas_src>

<mosaic_0001>
module attributes {stable_mosaic.version = 11 : i64} {
  func.func @_encoder_kernel(%arg0: i32, %arg1: memref<8x128xf32, #tpu.memory_space<vmem>>, %arg2: memref<128x512xf32, #tpu.memory_space<vmem>>, %arg3: memref<1x512xf32, #tpu.memory_space<vmem>>, %arg4: memref<512x512xf32, #tpu.memory_space<vmem>>, %arg5: memref<1x512xf32, #tpu.memory_space<vmem>>, %arg6: memref<512x128xf32, #tpu.memory_space<vmem>>, %arg7: memref<1x128xf32, #tpu.memory_space<vmem>>, %arg8: memref<8x128xf32, #tpu.memory_space<vmem>>) attributes {dimension_semantics = [#tpu.dimension_semantics<parallel>], iteration_bounds = array<i64: 1>, scalar_prefetch = 0 : i64, scratch_operands = 0 : i64, tpu.core_type = #tpu.core_type<tc>, window_params = [{transform_indices = @transform_0, window_bounds = array<i64: 8, 128>}, {pipeline_mode = #tpu.pipeline_mode<synchronous>, transform_indices = @transform_1, window_bounds = array<i64: 128, 512>}, {pipeline_mode = #tpu.pipeline_mode<synchronous>, transform_indices = @transform_2, window_bounds = array<i64: 1, 512>}, {pipeline_mode = #tpu.pipeline_mode<synchronous>, transform_indices = @transform_3, window_bounds = array<i64: 512, 512>}, {pipeline_mode = #tpu.pipeline_mode<synchronous>, transform_indices = @transform_4, window_bounds = array<i64: 1, 512>}, {pipeline_mode = #tpu.pipeline_mode<synchronous>, transform_indices = @transform_5, window_bounds = array<i64: 512, 128>}, {pipeline_mode = #tpu.pipeline_mode<synchronous>, transform_indices = @transform_6, window_bounds = array<i64: 1, 128>}, {transform_indices = @transform_7, window_bounds = array<i64: 8, 128>}]} {
    %c0 = arith.constant 0 : index
    %c0_0 = arith.constant 0 : index
    %0 = vector.load %arg1[%c0, %c0_0] : memref<8x128xf32, #tpu.memory_space<vmem>>, vector<8x128xf32>
    %c0_1 = arith.constant 0 : index
    %c0_2 = arith.constant 0 : index
    %1 = vector.load %arg2[%c0_1, %c0_2] : memref<128x512xf32, #tpu.memory_space<vmem>>, vector<128x512xf32>
    %cst = arith.constant dense<0.000000e+00> : vector<8x512xf32>
    %2 = tpu.matmul %0, %1, %cst {dimension_numbers = #tpu.dot_dimension_numbers<[1], [0], [0], [1], [0, 0, 1, 1], [], []>} : vector<8x128xf32>, vector<128x512xf32>, vector<8x512xf32> -> vector<8x512xf32>
    %c0_3 = arith.constant 0 : index
    %c0_4 = arith.constant 0 : index
    %3 = vector.load %arg3[%c0_3, %c0_4] : memref<1x512xf32, #tpu.memory_space<vmem>>, vector<1x512xf32>
    %4 = vector.broadcast %3 : vector<1x512xf32> to vector<8x512xf32>
    %5 = arith.addf %2, %4 : vector<8x512xf32>
    %cst_5 = arith.constant 0.000000e+00 : f32
    %6 = vector.broadcast %cst_5 : f32 to vector<8x512xf32>
    %7 = arith.maximumf %5, %6 : vector<8x512xf32>
    %c0_6 = arith.constant 0 : index
    %c0_7 = arith.constant 0 : index
    %8 = vector.load %arg4[%c0_6, %c0_7] : memref<512x512xf32, #tpu.memory_space<vmem>>, vector<512x512xf32>
    %cst_8 = arith.constant dense<0.000000e+00> : vector<8x512xf32>
    %9 = tpu.matmul %7, %8, %cst_8 {dimension_numbers = #tpu.dot_dimension_numbers<[1], [0], [0], [1], [0, 0, 1, 1], [], []>} : vector<8x512xf32>, vector<512x512xf32>, vector<8x512xf32> -> vector<8x512xf32>
    %c0_9 = arith.constant 0 : index
    %c0_10 = arith.constant 0 : index
    %10 = vector.load %arg5[%c0_9, %c0_10] : memref<1x512xf32, #tpu.memory_space<vmem>>, vector<1x512xf32>
    %11 = vector.broadcast %10 : vector<1x512xf32> to vector<8x512xf32>
    %12 = arith.addf %9, %11 : vector<8x512xf32>
    %cst_11 = arith.constant 0.000000e+00 : f32
    %13 = vector.broadcast %cst_11 : f32 to vector<8x512xf32>
    %14 = arith.maximumf %12, %13 : vector<8x512xf32>
    %c0_12 = arith.constant 0 : index
    %c0_13 = arith.constant 0 : index
    %15 = vector.load %arg6[%c0_12, %c0_13] : memref<512x128xf32, #tpu.memory_space<vmem>>, vector<512x128xf32>
    %cst_14 = arith.constant dense<0.000000e+00> : vector<8x128xf32>
    %16 = tpu.matmul %14, %15, %cst_14 {dimension_numbers = #tpu.dot_dimension_numbers<[1], [0], [0], [1], [0, 0, 1, 1], [], []>} : vector<8x512xf32>, vector<512x128xf32>, vector<8x128xf32> -> vector<8x128xf32>
    %c0_15 = arith.constant 0 : index
    %c0_16 = arith.constant 0 : index
    %17 = vector.load %arg7[%c0_15, %c0_16] : memref<1x128xf32, #tpu.memory_space<vmem>>, vector<1x128xf32>
    %18 = vector.broadcast %17 : vector<1x128xf32> to vector<8x128xf32>
    %19 = arith.addf %16, %18 : vector<8x128xf32>
    %c0_17 = arith.constant 0 : index
    %c0_18 = arith.constant 0 : index
    %20 = vector.load %arg8[%c0_17, %c0_18] : memref<8x128xf32, #tpu.memory_space<vmem>>, vector<8x128xf32>
    tpu.vector_store %arg8[%c0_17, %c0_18], %19 {strides = array<i32>} : memref<8x128xf32, #tpu.memory_space<vmem>>, vector<8x128xf32>,
    return
  }
  func.func @transform_0(%arg0: i32) -> (i32, i32) {
    %c0_i32 = arith.constant 0 : i32
    %c0_i32_0 = arith.constant 0 : i32
    return %arg0, %c0_i32 : i32, i32
  }
  func.func @transform_1(%arg0: i32) -> (i32, i32) {
    %c0_i32 = arith.constant 0 : i32
    %c0_i32_0 = arith.constant 0 : i32
    %c0_i32_1 = arith.constant 0 : i32
    return %c0_i32, %c0_i32_0 : i32, i32
  }
  func.func @transform_2(%arg0: i32) -> (i32, i32) {
    %c0_i32 = arith.constant 0 : i32
    %c0_i32_0 = arith.constant 0 : i32
    %c0_i32_1 = arith.constant 0 : i32
    return %c0_i32, %c0_i32_0 : i32, i32
  }
  func.func @transform_3(%arg0: i32) -> (i32, i32) {
    %c0_i32 = arith.constant 0 : i32
    %c0_i32_0 = arith.constant 0 : i32
    %c0_i32_1 = arith.constant 0 : i32
    return %c0_i32, %c0_i32_0 : i32, i32
  }
  func.func @transform_4(%arg0: i32) -> (i32, i32) {
    %c0_i32 = arith.constant 0 : i32
    %c0_i32_0 = arith.constant 0 : i32
    %c0_i32_1 = arith.constant 0 : i32
    return %c0_i32, %c0_i32_0 : i32, i32
  }
  func.func @transform_5(%arg0: i32) -> (i32, i32) {
    %c0_i32 = arith.constant 0 : i32
    %c0_i32_0 = arith.constant 0 : i32
    %c0_i32_1 = arith.constant 0 : i32
    return %c0_i32, %c0_i32_0 : i32, i32
  }
  func.func @transform_6(%arg0: i32) -> (i32, i32) {
    %c0_i32 = arith.constant 0 : i32
    %c0_i32_0 = arith.constant 0 : i32
    %c0_i32_1 = arith.constant 0 : i32
    return %c0_i32, %c0_i32_0 : i32, i32
  }
  func.func @transform_7(%arg0: i32) -> (i32, i32) {
    %c0_i32 = arith.constant 0 : i32
    %c0_i32_0 = arith.constant 0 : i32
    return %arg0, %c0_i32 : i32, i32
  }
}

</mosaic_0001>

<bundles_post_ra>
// kernel: encoder_forward.1
= control target key start
LH: loop header
LB: loop body
LE: loop exit
PB: predicated region body
PF: predicated region fallthrough
CT: control target
= control target key end

     0   :  { %12 = vsyncpa [#allocation3], 0  ;;  %s1812_s0 = inlined_call_operand.vmem [shape: f32[8,128], index: 0, kind: input, shape index: {}]   ;;  %s1813_s1 = inlined_call_operand.hbm [shape: f32[128,512], index: 1, kind: input, shape index: {}]   ;;  %s1814_s2 = inlined_call_operand.vmem [shape: f32[1,512], index: 2, kind: input, shape index: {}]   ;;  %s1815_s3 = inlined_call_operand.hbm [shape: f32[512,512], index: 3, kind: input, shape index: {}]   ;;  %s1816_s4 = inlined_call_operand.vmem [shape: f32[1,512], index: 4, kind: input, shape index: {}]   ;;  %s1817_s5 = inlined_call_operand.hbm [shape: f32[512,128], index: 5, kind: input, shape index: {}]   ;;  %s1818_s6 = inlined_call_operand.vmem [shape: f32[1,128], index: 6, kind: input, shape index: {}]   ;;  %s1819_s7 = inlined_call_operand.hbm [shape: f32[8,128], index: 7, kind: output, shape index: {}]  }
   0x1   :  { %13 = vsyncpa [#allocation6], 0 }
   0x2   :  { %14 = vsyncpa [#allocation4], 0  ;;  %s1661_s24 = smov [#allocation5]   ;;  %s1662_s26 = smov [#allocation2]  }
   0x3   :  { %s36_s25 = sshll.u32 %s1661_s24, 4  ;;  %s22_s27 = sshll.u32 %s1662_s26, 4  ;;  %s37_s25 = int_to_ptr.vmem [resolvable:$true] %s36_s25  ;;  %s1710_s27 = int_to_ptr.vmem [resolvable:$true] %s22_s27 }
   0x4   :  { %s1567_s30 = scalar_lea.hbm %s1815_s3, 32768 }
   0x5   :  { %p1568_p0 = scmp.ne.s32.totalorder %s1815_s3, %s1567_s30  ;;  %p1571_p1 = scmp.lt.u32.totalorder %s1567_s30, %s1815_s3 }
   0x7   :  { %p1573_p2 = pnand %p1571_p1, %p1568_p0 }
   0x9   :  { %1576 = shalt.err (!%p1573_p2)
}
   0xa   :  { %s1577_s12 = scalar_lea.vmem %s37_s25, 32768  ;;  %p1582_p4 = scmp.lt.s32.totalorder %s37_s25, %s37_s25 }
   0xb   :  { %p1578_p3 = scmp.ne.s32.totalorder %s37_s25, %s1577_s12  ;;  %p1583_p5 = scmp.lt.s32.totalorder %s1577_s12, %s1577_s12 }
   0xd   :  { %p1584_p6 = por %p1583_p5, %p1582_p4 }
   0xf   :  { %p1585_p7 = pnand %p1584_p6, %p1578_p3 }
  0x11   :  { %1588 = shalt.err (!%p1585_p7)
}
  0x12   :  { %s1663_s13 = smov 512   ;;  %s1664_s14 = smov 32  }
  0x13   :  { %42 = dma.hbm_to_vmem [thread:$0]  %s1815_s3, 32768, %s37_s25, [#allocation6], %s1663_s13, %s1663_s13, %s1664_s14  }
  0x14   :  { %s1589_s19 = scalar_lea.hbm %s1813_s1, 8192 }
  0x15   :  { %p1590_p8 = scmp.ne.s32.totalorder %s1813_s1, %s1589_s19  ;;  %p1593_p9 = scmp.lt.u32.totalorder %s1589_s19, %s1813_s1 }
  0x17   :  { %p1595_p10 = pnand %p1593_p9, %p1590_p8 }
  0x19   :  { %1598 = shalt.err (!%p1595_p10)
}
  0x1a   :  { %s1599_s24 = scalar_lea.vmem %s1710_s27, 8192  ;;  %p1604_p12 = scmp.lt.s32.totalorder %s1710_s27, %s1710_s27 }
  0x1b   :  { %p1600_p11 = scmp.ne.s32.totalorder %s1710_s27, %s1599_s24  ;;  %p1605_p13 = scmp.lt.s32.totalorder %s1599_s24, %s1599_s24 }
  0x1d   :  { %p1606_p0 = por %p1605_p13, %p1604_p12 }
  0x1f   :  { %p1607_p1 = pnand %p1606_p0, %p1600_p11 }
  0x21   :  { %1610 = shalt.err (!%p1607_p1)
}
  0x22   :  { %28 = dma.hbm_to_vmem [thread:$0]  %s1813_s1, 8192, %s1710_s27, [#allocation3], %s1663_s13, %s1663_s13, %s1664_s14  }
  0x23   :  { %s1665_s26 = smov [#allocation7]   ;;  %s1611_s8 = scalar_lea.hbm %s1817_s5, 8192 }
  0x24   :  { %s50_s28 = sshll.u32 %s1665_s26, 4  ;;  %p1612_p2 = scmp.ne.s32.totalorder %s1817_s5, %s1611_s8  ;;  %s51_s28 = int_to_ptr.vmem [resolvable:$true] %s50_s28 }
  0x25   :  { %p1615_p3 = scmp.lt.u32.totalorder %s1611_s8, %s1817_s5 }
  0x27   :  { %p1617_p4 = pnand %p1615_p3, %p1612_p2 }
  0x29   :  { %1620 = shalt.err (!%p1617_p4)
}
  0x2a   :  { %s1621_s15 = scalar_lea.vmem %s51_s28, 8192  ;;  %p1626_p6 = scmp.lt.s32.totalorder %s51_s28, %s51_s28 }
  0x2b   :  { %p1622_p5 = scmp.ne.s32.totalorder %s51_s28, %s1621_s15  ;;  %p1627_p7 = scmp.lt.s32.totalorder %s1621_s15, %s1621_s15 }
  0x2d   :  { %p1628_p8 = por %p1627_p7, %p1626_p6 }
  0x2f   :  { %p1629_p9 = pnand %p1628_p8, %p1622_p5 }
  0x31   :  { %1632 = shalt.err (!%p1629_p9)
}
  0x32   :  { %s1666_s1 = smov 128   ;;  %s1667_s27 = smov 8  }
  0x33   :  { %56 = dma.hbm_to_vmem [thread:$0]  %s1817_s5, 8192, %s51_s28, [#allocation6], %s1666_s1, %s1666_s1, %s1667_s27  }
  0x34   :  { %1655 = dma.done.wait [#allocation3], 8192  }
  0x35   :  { %1656 = vsyncadd [#allocation3], 4294959104 }
  0x36   :  { %1657 = dma.done.wait [#allocation6], 40960  }
  0x37   :  { %1658 = vsyncadd [#allocation6], 4294926336  ;;  %v1668_v0 = vmov 0.0   ;;  %v70_v1 = vld [vmem:[#allocation2 + $0x8] sm:$0xff]  ;;  %v69_v3 = vld [vmem:[#allocation2] sm:$0xff]  ;;  %s1669_s20 = smov [#allocation8]  }
  0x38   :  { %219 = vmatprep.mubr.f32.mxu0 %v1668_v0  ;;  %290 = vmatprep.mubr.f32.mxu1 %v1668_v0  ;;  %v74_v2 = vld [vmem:[#allocation2 + $0x28] sm:$0xff]  ;;  %v73_v5 = vld [vmem:[#allocation2 + $0x20] sm:$0xff]  ;;  %v72_v28 = vld [vmem:[#allocation2 + $0x18] sm:$0xff]  ;;  %s1085_s21 = sshll.u32 %s1669_s20, 4  ;;  %s1086_s21 = int_to_ptr.vmem [resolvable:$true] %s1085_s21 }
  0x39   :  { %v1166_v4 = vpack.c.bf16 %v74_v2, %v70_v1  ;;  %v78_v6 = vld [vmem:[#allocation2 + $0x48] sm:$0xff]  ;;  %v1168_v8 = vpack.c.bf16 %v73_v5, %v69_v3  ;;  %v77_v10 = vld [vmem:[#allocation2 + $0x40] sm:$0xff]  ;;  %v76_v29 = vld [vmem:[#allocation2 + $0x38] sm:$0xff]  ;;  %s1633_s22 = scalar_lea.vmem %s1086_s21, 128  ;;  %p1638_p11 = scmp.lt.s32.totalorder %s1086_s21, %s1086_s21 }
  0x3a   :  { %v82_v7 = vld [vmem:[#allocation2 + $0x68] sm:$0xff]  ;;  %v81_v11 = vld [vmem:[#allocation2 + $0x60] sm:$0xff]  ;;  %v71_v30 = vld [vmem:[#allocation2 + $0x10] sm:$0xff]  ;;  %v1198_v32 = vpack.c.bf16 %v76_v29, %v72_v28  ;;  %p1634_p10 = scmp.ne.s32.totalorder %s1086_s21, %s1633_s22  ;;  %p1639_p12 = scmp.lt.s32.totalorder %s1633_s22, %s1633_s22 }
  0x3b   :  { %v1170_v9 = vpack.c.bf16 %v82_v7, %v78_v6  ;;  %v86_v12 = vld [vmem:[#allocation2 + $0x88] sm:$0xff]  ;;  %1167 = vmatprep.subr.bf16.mxu0 %v1166_v4  ;;  %v1172_v14 = vpack.c.bf16 %v81_v11, %v77_v10  ;;  %v85_v16 = vld [vmem:[#allocation2 + $0x80] sm:$0xff]  ;;  %v75_v33 = vld [vmem:[#allocation2 + $0x30] sm:$0xff] }
  0x3c   :  { %v90_v13 = vld [vmem:[#allocation2 + $0xa8] sm:$0xff]  ;;  %1169 = vmatpush1.bf16.msra.mxu0 %v1168_v8  ;;  %v89_v17 = vld [vmem:[#allocation2 + $0xa0] sm:$0xff]  ;;  %v80_v34 = vld [vmem:[#allocation2 + $0x58] sm:$0xff]  ;;  %v1200_v37 = vpack.c.bf16 %v75_v33, %v71_v30  ;;  %1199 = vmatprep.subr.bf16.mxu1 %v1198_v32  ;;  %p1640_p13 = por %p1639_p12, %p1638_p11 }
  0x3d   :  { %1171 = vmatprep.subr.bf16.mxu0 %v1170_v9  ;;  %v1174_v15 = vpack.c.bf16 %v90_v13, %v86_v12  ;;  %v94_v18 = vld [vmem:[#allocation2 + $0xc8] sm:$0xff]  ;;  %v1176_v20 = vpack.c.bf16 %v89_v17, %v85_v16  ;;  %v93_v22 = vld [vmem:[#allocation2 + $0xc0] sm:$0xff]  ;;  %v84_v35 = vld [vmem:[#allocation2 + $0x78] sm:$0xff] }
  0x3e   :  { %v98_v19 = vld [vmem:[#allocation2 + $0xe8] sm:$0xff]  ;;  %v97_v23 = vld [vmem:[#allocation2 + $0xe0] sm:$0xff]  ;;  %v1202_v38 = vpack.c.bf16 %v84_v35, %v80_v34  ;;  %v79_v39 = vld [vmem:[#allocation2 + $0x50] sm:$0xff]  ;;  %1201 = vmatpush1.bf16.msra.mxu1 %v1200_v37  ;;  %p1641_p0 = pnand %p1640_p13, %p1634_p10 }
  0x3f   :  { %v1178_v21 = vpack.c.bf16 %v98_v19, %v94_v18  ;;  %v102_v24 = vld [vmem:[#allocation2 + $0x108] sm:$0xff]  ;;  %v101_v26 = vld [vmem:[#allocation2 + $0x100] sm:$0xff]  ;;  %v1180_v31 = vpack.c.bf16 %v97_v23, %v93_v22  ;;  %v83_v40 = vld [vmem:[#allocation2 + $0x70] sm:$0xff] }
  0x40   :  { %1173 = vmatpush1.bf16.msra.mxu0 %v1172_v14  ;;  %v106_v25 = vld [vmem:[#allocation2 + $0x128] sm:$0xff]  ;;  %v105_v27 = vld [vmem:[#allocation2 + $0x120] sm:$0xff]  ;;  %v88_v41 = vld [vmem:[#allocation2 + $0x98] sm:$0xff]  ;;  %v1204_v45 = vpack.c.bf16 %v83_v40, %v79_v39  ;;  %1203 = vmatprep.subr.bf16.mxu1 %v1202_v38 }
  0x41   :  { %1175 = vmatprep.subr.bf16.mxu0 %v1174_v15  ;;  %v1182_v36 = vpack.c.bf16 %v106_v25, %v102_v24  ;;  %v110_v42 = vld [vmem:[#allocation2 + $0x148] sm:$0xff]  ;;  %v92_v44 = vld [vmem:[#allocation2 + $0xb8] sm:$0xff]  ;;  %v1184_v46 = vpack.c.bf16 %v105_v27, %v101_v26  ;;  %v109_v47 = vld [vmem:[#allocation2 + $0x140] sm:$0xff] }
  0x42   :  { %v114_v43 = vld [vmem:[#allocation2 + $0x168] sm:$0xff]  ;;  %v1206_v48 = vpack.c.bf16 %v92_v44, %v88_v41  ;;  %v87_v49 = vld [vmem:[#allocation2 + $0x90] sm:$0xff]  ;;  %v113_v52 = vld [vmem:[#allocation2 + $0x160] sm:$0xff]  ;;  %1205 = vmatpush1.bf16.msra.mxu1 %v1204_v45 }
  0x43   :  { %v91_v50 = vld [vmem:[#allocation2 + $0xb0] sm:$0xff]  ;;  %v1186_v51 = vpack.c.bf16 %v114_v43, %v110_v42  ;;  %v96_v53 = vld [vmem:[#allocation2 + $0xd8] sm:$0xff]  ;;  %v118_v55 = vld [vmem:[#allocation2 + $0x188] sm:$0xff]  ;;  %v1188_v58 = vpack.c.bf16 %v113_v52, %v109_v47 }
  0x44   :  { %1177 = vmatpush1.bf16.msra.mxu0 %v1176_v20  ;;  %v100_v54 = vld [vmem:[#allocation2 + $0xf8] sm:$0xff]  ;;  %v122_v56 = vld [vmem:[#allocation2 + $0x1a8] sm:$0xff]  ;;  %v1208_v57 = vpack.c.bf16 %v91_v50, %v87_v49  ;;  %v117_v59 = vld [vmem:[#allocation2 + $0x180] sm:$0xff]  ;;  %1207 = vmatprep.subr.bf16.mxu1 %v1206_v48 }
  0x45   :  { %1179 = vmatprep.subr.bf16.mxu0 %v1178_v21  ;;  %v1210_v60 = vpack.c.bf16 %v100_v54, %v96_v53  ;;  %v95_v61 = vld [vmem:[#allocation2 + $0xd0] sm:$0xff]  ;;  %v1190_v63 = vpack.c.bf16 %v122_v56, %v118_v55  ;;  %v121_v0 = vld [vmem:[#allocation2 + $0x1a0] sm:$0xff]  ;;  %v104_v1 = vld [vmem:[#allocation2 + $0x118] sm:$0xff] }
  0x46   :  { %v99_v62 = vld [vmem:[#allocation2 + $0xf0] sm:$0xff]  ;;  %v108_v2 = vld [vmem:[#allocation2 + $0x138] sm:$0xff]  ;;  %v126_v3 = vld [vmem:[#allocation2 + $0x1c8] sm:$0xff]  ;;  %1209 = vmatpush1.bf16.msra.mxu1 %v1208_v57  ;;  %v1192_v6 = vpack.c.bf16 %v121_v0, %v117_v59 }
  0x47   :  { %v130_v4 = vld [vmem:[#allocation2 + $0x1e8] sm:$0xff]  ;;  %v1212_v5 = vpack.c.bf16 %v99_v62, %v95_v61  ;;  %v125_v7 = vld [vmem:[#allocation2 + $0x1c0] sm:$0xff]  ;;  %1211 = vmatprep.subr.bf16.mxu1 %v1210_v60  ;;  %v1214_v8 = vpack.c.bf16 %v108_v2, %v104_v1  ;;  %v103_v9 = vld [vmem:[#allocation2 + $0x110] sm:$0xff] }
  0x48   :  { %1181 = vmatpush1.bf16.msra.mxu0 %v1180_v31  ;;  %v107_v10 = vld [vmem:[#allocation2 + $0x130] sm:$0xff]  ;;  %v1194_v11 = vpack.c.bf16 %v130_v4, %v126_v3  ;;  %v129_v12 = vld [vmem:[#allocation2 + $0x1e0] sm:$0xff]  ;;  %v112_v13 = vld [vmem:[#allocation2 + $0x158] sm:$0xff] }
  0x49   :  { %1183 = vmatprep.subr.bf16.mxu0 %v1182_v36  ;;  %v116_v14 = vld [vmem:[#allocation2 + $0x178] sm:$0xff]  ;;  %v302_v15 = vld [vmem:[#allocation5 + $0x8] sm:$0xff]  ;;  %v1216_v17 = vpack.c.bf16 %v107_v10, %v103_v9  ;;  %v1196_v18 = vpack.c.bf16 %v129_v12, %v125_v7  ;;  %v111_v20 = vld [vmem:[#allocation2 + $0x150] sm:$0xff] }
  0x4a   :  { %v306_v16 = vld [vmem:[#allocation5 + $0x28] sm:$0xff]  ;;  %1213 = vmatpush1.bf16.msra.mxu1 %v1212_v5  ;;  %v1218_v19 = vpack.c.bf16 %v116_v14, %v112_v13  ;;  %v115_v21 = vld [vmem:[#allocation2 + $0x170] sm:$0xff]  ;;  %v120_v22 = vld [vmem:[#allocation2 + $0x198] sm:$0xff] }
  0x4b   :  { %1215 = vmatprep.subr.bf16.mxu1 %v1214_v8  ;;  %v124_v23 = vld [vmem:[#allocation2 + $0x1b8] sm:$0xff]  ;;  %v1230_v24 = vpack.c.bf16 %v306_v16, %v302_v15  ;;  %v301_v25 = vld [vmem:[#allocation5] sm:$0xff]  ;;  %v310_v27 = vld [vmem:[#allocation5 + $0x48] sm:$0xff]  ;;  %v1220_v30 = vpack.c.bf16 %v115_v21, %v111_v20 }
  0x4c   :  { %1185 = vmatpush1.bf16.msra.mxu0 %v1184_v46  ;;  %v305_v26 = vld [vmem:[#allocation5 + $0x20] sm:$0xff]  ;;  %v314_v28 = vld [vmem:[#allocation5 + $0x68] sm:$0xff]  ;;  %v1222_v31 = vpack.c.bf16 %v124_v23, %v120_v22  ;;  %v119_v32 = vld [vmem:[#allocation2 + $0x190] sm:$0xff] }
  0x4d   :  { %1187 = vmatprep.subr.bf16.mxu0 %v1186_v51  ;;  %v1756_v29 = vld [vmem:[%s1812_s0] sm:$0xff]  ;;  %v123_v33 = vld [vmem:[#allocation2 + $0x1b0] sm:$0xff]  ;;  %v128_v34 = vld [vmem:[#allocation2 + $0x1d8] sm:$0xff]  ;;  %v1232_v35 = vpack.c.bf16 %v305_v26, %v301_v25  ;;  %v1234_v37 = vpack.c.bf16 %v314_v28, %v310_v27 }
  0x4e   :  { %1217 = vmatpush1.bf16.msra.mxu1 %v1216_v17  ;;  %v132_v36 = vld [vmem:[#allocation2 + $0x1f8] sm:$0xff]  ;;  %v309_v38 = vld [vmem:[#allocation5 + $0x40] sm:$0xff]  ;;  %v318_v40 = vld [vmem:[#allocation5 + $0x88] sm:$0xff]  ;;  %v1224_v42 = vpack.c.bf16 %v123_v33, %v119_v32 }
  0x4f   :  { %1219 = vmatprep.subr.bf16.mxu1 %v1218_v19  ;;  %v313_v39 = vld [vmem:[#allocation5 + $0x60] sm:$0xff]  ;;  %v322_v41 = vld [vmem:[#allocation5 + $0xa8] sm:$0xff]  ;;  %v1226_v43 = vpack.c.bf16 %v132_v36, %v128_v34  ;;  %v127_v44 = vld [vmem:[#allocation2 + $0x1d0] sm:$0xff] }
  0x50   :  { %1189 = vmatpush1.bf16.msra.mxu0 %v1188_v58  ;;  %v131_v45 = vld [vmem:[#allocation2 + $0x1f0] sm:$0xff]  ;;  %v304_v46 = vld [vmem:[#allocation5 + $0x18] sm:$0xff]  ;;  %v1236_v47 = vpack.c.bf16 %v313_v39, %v309_v38  ;;  %v1238_v49 = vpack.c.bf16 %v322_v41, %v318_v40  ;;  %v317_v50 = vld [vmem:[#allocation5 + $0x80] sm:$0xff] }
  0x51   :  { %1191 = vmatprep.subr.bf16.mxu0 %v1190_v63  ;;  %v308_v48 = vld [vmem:[#allocation5 + $0x38] sm:$0xff]  ;;  %v321_v51 = vld [vmem:[#allocation5 + $0xa0] sm:$0xff]  ;;  %v326_v52 = vld [vmem:[#allocation5 + $0xc8] sm:$0xff]  ;;  %v1228_v54 = vpack.c.bf16 %v131_v45, %v127_v44 }
  0x52   :  { %1221 = vmatpush1.bf16.msra.mxu1 %v1220_v30  ;;  %v330_v53 = vld [vmem:[#allocation5 + $0xe8] sm:$0xff]  ;;  %v1358_v55 = vpack.c.bf16 %v308_v48, %v304_v46  ;;  %v303_v56 = vld [vmem:[#allocation5 + $0x10] sm:$0xff]  ;;  %v312_v58 = vld [vmem:[#allocation5 + $0x58] sm:$0xff]  ;;  %v1240_v59 = vpack.c.bf16 %v321_v51, %v317_v50 }
  0x53   :  { %1223 = vmatprep.subr.bf16.mxu1 %v1222_v31  ;;  %v307_v57 = vld [vmem:[#allocation5 + $0x30] sm:$0xff]  ;;  %v316_v60 = vld [vmem:[#allocation5 + $0x78] sm:$0xff]  ;;  %v1242_v61 = vpack.c.bf16 %v330_v53, %v326_v52  ;;  %v325_v62 = vld [vmem:[#allocation5 + $0xc0] sm:$0xff] }
  0x54   :  { %1193 = vmatpush1.bf16.msra.mxu0 %v1192_v6  ;;  %v329_v63 = vld [vmem:[#allocation5 + $0xe0] sm:$0xff]  ;;  %v334_v0 = vld [vmem:[#allocation5 + $0x108] sm:$0xff]  ;;  %v1360_v2 = vpack.c.bf16 %v307_v57, %v303_v56  ;;  %v1362_v3 = vpack.c.bf16 %v316_v60, %v312_v58  ;;  %v311_v4 = vld [vmem:[#allocation5 + $0x50] sm:$0xff] }
  0x55   :  { %1195 = vmatprep.subr.bf16.mxu0 %v1194_v11  ;;  %v338_v1 = vld [vmem:[#allocation5 + $0x128] sm:$0xff]  ;;  %v315_v5 = vld [vmem:[#allocation5 + $0x70] sm:$0xff]  ;;  %v320_v6 = vld [vmem:[#allocation5 + $0x98] sm:$0xff]  ;;  %v1244_v7 = vpack.c.bf16 %v329_v63, %v325_v62 }
  0x56   :  { %1225 = vmatpush1.bf16.msra.mxu1 %v1224_v42  ;;  %v324_v8 = vld [vmem:[#allocation5 + $0xb8] sm:$0xff]  ;;  %v1246_v9 = vpack.c.bf16 %v338_v1, %v334_v0  ;;  %v333_v10 = vld [vmem:[#allocation5 + $0x100] sm:$0xff]  ;;  %v342_v12 = vld [vmem:[#allocation5 + $0x148] sm:$0xff]  ;;  %v1364_v14 = vpack.c.bf16 %v315_v5, %v311_v4 }
  0x57   :  { %1227 = vmatprep.subr.bf16.mxu1 %v1226_v43  ;;  %v337_v11 = vld [vmem:[#allocation5 + $0x120] sm:$0xff]  ;;  %v346_v13 = vld [vmem:[#allocation5 + $0x168] sm:$0xff]  ;;  %v1366_v15 = vpack.c.bf16 %v324_v8, %v320_v6  ;;  %v319_v16 = vld [vmem:[#allocation5 + $0x90] sm:$0xff] }
  0x58   :  { %1197 = vmatpush1.bf16.msra.mxu0 %v1196_v18  ;;  %v323_v17 = vld [vmem:[#allocation5 + $0xb0] sm:$0xff]  ;;  %v328_v18 = vld [vmem:[#allocation5 + $0xd8] sm:$0xff]  ;;  %v1248_v19 = vpack.c.bf16 %v337_v11, %v333_v10  ;;  %v1250_v21 = vpack.c.bf16 %v346_v13, %v342_v12  ;;  %v341_v22 = vld [vmem:[#allocation5 + $0x140] sm:$0xff] }
  0x59   :  { %1231 = vmatprep.subr.bf16.mxu0 %v1230_v24  ;;  %v332_v20 = vld [vmem:[#allocation5 + $0xf8] sm:$0xff]  ;;  %v345_v23 = vld [vmem:[#allocation5 + $0x160] sm:$0xff]  ;;  %v350_v24 = vld [vmem:[#allocation5 + $0x188] sm:$0xff]  ;;  %v1368_v26 = vpack.c.bf16 %v323_v17, %v319_v16 }
  0x5a   :  { %1229 = vmatpush1.bf16.msra.mxu1 %v1228_v54  ;;  %v354_v25 = vld [vmem:[#allocation5 + $0x1a8] sm:$0xff]  ;;  %v1370_v27 = vpack.c.bf16 %v332_v20, %v328_v18  ;;  %v327_v28 = vld [vmem:[#allocation5 + $0xd0] sm:$0xff]  ;;  %v336_v30 = vld [vmem:[#allocation5 + $0x118] sm:$0xff]  ;;  %v1252_v31 = vpack.c.bf16 %v345_v23, %v341_v22 }
  0x5b   :  { %220 = vmatmul.mubr.f32.vlgmr.msra.gmra.mrb[0].mxu0 %v1756_v29  ;;  %1359 = vmatprep.subr.bf16.mxu1 %v1358_v55  ;;  %v340_v32 = vld [vmem:[#allocation5 + $0x138] sm:$0xff]  ;;  %v1254_v33 = vpack.c.bf16 %v354_v25, %v350_v24  ;;  %v349_v34 = vld [vmem:[#allocation5 + $0x180] sm:$0xff]  ;;  %v358_v36 = vld [vmem:[#allocation5 + $0x1c8] sm:$0xff] }
  0x5c   :  { %1233 = vmatpush1.bf16.msra.mxu0 %v1232_v35  ;;  %v353_v35 = vld [vmem:[#allocation5 + $0x1a0] sm:$0xff]  ;;  %v1374_v39 = vpack.c.bf16 %v340_v32, %v336_v30  ;;  %v335_v40 = vld [vmem:[#allocation5 + $0x110] sm:$0xff]  ;;  %v344_v42 = vld [vmem:[#allocation5 + $0x158] sm:$0xff] }
  0x5d   :  { %1235 = vmatprep.subr.bf16.mxu0 %v1234_v37  ;;  %291 = vmatmul.mubr.f32.vlgmr.msra.gmra.mrb[0].mxu1 %v1756_v29  ;;  %v331_v29 = vld [vmem:[#allocation5 + $0xf0] sm:$0xff]  ;;  %v362_v37 = vld [vmem:[#allocation5 + $0x1e8] sm:$0xff]  ;;  %v1256_v43 = vpack.c.bf16 %v353_v35, %v349_v34  ;;  %v348_v44 = vld [vmem:[#allocation5 + $0x178] sm:$0xff] }
  0x5e   :  { %1361 = vmatpush1.bf16.msra.mxu1 %v1360_v2  ;;  %v1372_v38 = vpack.c.bf16 %v331_v29, %v327_v28  ;;  %v339_v41 = vld [vmem:[#allocation5 + $0x130] sm:$0xff]  ;;  %v1258_v45 = vpack.c.bf16 %v362_v37, %v358_v36  ;;  %v357_v46 = vld [vmem:[#allocation5 + $0x1c0] sm:$0xff]  ;;  %v366_v48 = vld [vmem:[#allocation5 + $0x208] sm:$0xff]  ;;  %v1378_v51 = vpack.c.bf16 %v348_v44, %v344_v42 }
  0x5f   :  { %1363 = vmatprep.subr.bf16.mxu1 %v1362_v3  ;;  %v1376_v50 = vpack.c.bf16 %v339_v41, %v335_v40  ;;  %v343_v52 = vld [vmem:[#allocation5 + $0x150] sm:$0xff]  ;;  %v352_v54 = vld [vmem:[#allocation5 + $0x198] sm:$0xff]  ;;  %v365_v58 = vld [vmem:[#allocation5 + $0x200] sm:$0xff] }
  0x60   :  { %1237 = vmatpush1.bf16.msra.mxu0 %v1236_v47  ;;  %v361_v47 = vld [vmem:[#allocation5 + $0x1e0] sm:$0xff]  ;;  %v347_v53 = vld [vmem:[#allocation5 + $0x170] sm:$0xff]  ;;  %v356_v56 = vld [vmem:[#allocation5 + $0x1b8] sm:$0xff] }
  0x61   :  { %1239 = vmatprep.subr.bf16.mxu0 %v1238_v49  ;;  %v370_v49 = vld [vmem:[#allocation5 + $0x228] sm:$0xff]  ;;  %v1260_v55 = vpack.c.bf16 %v361_v47, %v357_v46  ;;  %v1380_v62 = vpack.c.bf16 %v347_v53, %v343_v52  ;;  %v1382_v63 = vpack.c.bf16 %v356_v56, %v352_v54  ;;  %v351_v0 = vld [vmem:[#allocation5 + $0x190] sm:$0xff]  ;;  %v360_v2 = vld [vmem:[#allocation5 + $0x1d8] sm:$0xff] }
  0x62   :  { %1365 = vmatpush1.bf16.msra.mxu1 %v1364_v14  ;;  %v1262_v57 = vpack.c.bf16 %v370_v49, %v366_v48  ;;  %v374_v60 = vld [vmem:[#allocation5 + $0x248] sm:$0xff]  ;;  %v355_v1 = vld [vmem:[#allocation5 + $0x1b0] sm:$0xff]  ;;  %v364_v4 = vld [vmem:[#allocation5 + $0x1f8] sm:$0xff] }
  0x63   :  { %1367 = vmatprep.subr.bf16.mxu1 %v1366_v15  ;;  %v373_v6 = vld [vmem:[#allocation5 + $0x240] sm:$0xff]  ;;  %v382_v8 = vld [vmem:[#allocation5 + $0x288] sm:$0xff]  ;;  %v1384_v10 = vpack.c.bf16 %v355_v1, %v351_v0  ;;  %v1386_v11 = vpack.c.bf16 %v364_v4, %v360_v2  ;;  %v359_v12 = vld [vmem:[#allocation5 + $0x1d0] sm:$0xff] }
  0x64   :  { %1241 = vmatpush1.bf16.msra.mxu0 %v1240_v59  ;;  %v369_v59 = vld [vmem:[#allocation5 + $0x220] sm:$0xff]  ;;  %v363_v13 = vld [vmem:[#allocation5 + $0x1f0] sm:$0xff]  ;;  %v368_v14 = vld [vmem:[#allocation5 + $0x218] sm:$0xff] }
  0x65   :  { %1243 = vmatprep.subr.bf16.mxu0 %v1242_v61  ;;  %v378_v61 = vld [vmem:[#allocation5 + $0x268] sm:$0xff]  ;;  %v1264_v3 = vpack.c.bf16 %v369_v59, %v365_v58  ;;  %v372_v16 = vld [vmem:[#allocation5 + $0x238] sm:$0xff]  ;;  %v381_v18 = vld [vmem:[#allocation5 + $0x280] sm:$0xff]  ;;  %v1388_v22 = vpack.c.bf16 %v363_v13, %v359_v12 }
  0x66   :  { %1369 = vmatpush1.bf16.msra.mxu1 %v1368_v26  ;;  %v1266_v5 = vpack.c.bf16 %v378_v61, %v374_v60  ;;  %v390_v20 = vld [vmem:[#allocation5 + $0x2c8] sm:$0xff]  ;;  %v1390_v23 = vpack.c.bf16 %v372_v16, %v368_v14  ;;  %v367_v24 = vld [vmem:[#allocation5 + $0x210] sm:$0xff]  ;;  %v376_v26 = vld [vmem:[#allocation5 + $0x258] sm:$0xff] }
  0x67   :  { %1371 = vmatprep.subr.bf16.mxu1 %v1370_v27  ;;  %v371_v25 = vld [vmem:[#allocation5 + $0x230] sm:$0xff]  ;;  %v380_v28 = vld [vmem:[#allocation5 + $0x278] sm:$0xff]  ;;  %v389_v30 = vld [vmem:[#allocation5 + $0x2c0] sm:$0xff] }
  0x68   :  { %1245 = vmatpush1.bf16.msra.mxu0 %v1244_v7  ;;  %v377_v7 = vld [vmem:[#allocation5 + $0x260] sm:$0xff]  ;;  %v398_v32 = vld [vmem:[#allocation5 + $0x308] sm:$0xff]  ;;  %v1392_v34 = vpack.c.bf16 %v371_v25, %v367_v24  ;;  %v1394_v35 = vpack.c.bf16 %v380_v28, %v376_v26  ;;  %v375_v36 = vld [vmem:[#allocation5 + $0x250] sm:$0xff] }
  0x69   :  { %1247 = vmatprep.subr.bf16.mxu0 %v1246_v9  ;;  %v386_v9 = vld [vmem:[#allocation5 + $0x2a8] sm:$0xff]  ;;  %v1268_v15 = vpack.c.bf16 %v377_v7, %v373_v6  ;;  %v379_v37 = vld [vmem:[#allocation5 + $0x270] sm:$0xff]  ;;  %v388_v40 = vld [vmem:[#allocation5 + $0x2b8] sm:$0xff] }
  0x6a   :  { %1373 = vmatpush1.bf16.msra.mxu1 %v1372_v38  ;;  %v1270_v17 = vpack.c.bf16 %v386_v9, %v382_v8  ;;  %v384_v38 = vld [vmem:[#allocation5 + $0x298] sm:$0xff]  ;;  %v397_v42 = vld [vmem:[#allocation5 + $0x300] sm:$0xff]  ;;  %v406_v44 = vld [vmem:[#allocation5 + $0x348] sm:$0xff]  ;;  %v1396_v46 = vpack.c.bf16 %v379_v37, %v375_v36 }
  0x6b   :  { %1375 = vmatprep.subr.bf16.mxu1 %v1374_v39  ;;  %v1398_v47 = vpack.c.bf16 %v388_v40, %v384_v38  ;;  %v383_v48 = vld [vmem:[#allocation5 + $0x290] sm:$0xff]  ;;  %v396_v52 = vld [vmem:[#allocation5 + $0x2f8] sm:$0xff]  ;;  %v405_v54 = vld [vmem:[#allocation5 + $0x340] sm:$0xff]  ;;  %v135_v40 = vlaneseq }
  0x6c   :  { %1249 = vmatpush1.bf16.msra.mxu0 %v1248_v19  ;;  %v385_v19 = vld [vmem:[#allocation5 + $0x2a0] sm:$0xff]  ;;  %v387_v49 = vld [vmem:[#allocation5 + $0x2b0] sm:$0xff]  ;;  %v414_v56 = vld [vmem:[#allocation5 + $0x388] sm:$0xff] }
  0x6d   :  { %1251 = vmatprep.subr.bf16.mxu0 %v1250_v21  ;;  %v394_v21 = vld [vmem:[#allocation5 + $0x2e8] sm:$0xff]  ;;  %v1272_v27 = vpack.c.bf16 %v385_v19, %v381_v18  ;;  %v1400_v58 = vpack.c.bf16 %v387_v49, %v383_v48  ;;  %v391_v60 = vld [vmem:[#allocation5 + $0x2d0] sm:$0xff]  ;;  %v404_v0 = vld [vmem:[#allocation5 + $0x338] sm:$0xff] }
  0x6e   :  { %1377 = vmatpush1.bf16.msra.mxu1 %v1376_v50  ;;  %v1274_v29 = vpack.c.bf16 %v394_v21, %v390_v20  ;;  %v392_v50 = vld [vmem:[#allocation5 + $0x2d8] sm:$0xff]  ;;  %v395_v61 = vld [vmem:[#allocation5 + $0x2f0] sm:$0xff]  ;;  %v413_v2 = vld [vmem:[#allocation5 + $0x380] sm:$0xff] }
  0x6f   :  { %1379 = vmatprep.subr.bf16.mxu1 %v1378_v51  ;;  %v1402_v59 = vpack.c.bf16 %v396_v52, %v392_v50  ;;  %v1404_v4 = vpack.c.bf16 %v395_v61, %v391_v60  ;;  %v399_v6 = vld [vmem:[#allocation5 + $0x310] sm:$0xff]  ;;  %v408_v9 = vld [vmem:[#allocation5 + $0x358] sm:$0xff]  ;;  %v425_v28 = vld [vmem:[#allocation5 + $0x3e0] sm:$0xff] }
  0x70   :  { %1253 = vmatpush1.bf16.msra.mxu0 %v1252_v31  ;;  %v393_v31 = vld [vmem:[#allocation5 + $0x2e0] sm:$0xff]  ;;  %v403_v7 = vld [vmem:[#allocation5 + $0x330] sm:$0xff]  ;;  %v420_v16 = vld [vmem:[#allocation5 + $0x3b8] sm:$0xff] }
  0x71   :  { %1255 = vmatprep.subr.bf16.mxu0 %v1254_v33  ;;  %v402_v33 = vld [vmem:[#allocation5 + $0x328] sm:$0xff]  ;;  %v1276_v39 = vpack.c.bf16 %v393_v31, %v389_v30  ;;  %v407_v13 = vld [vmem:[#allocation5 + $0x350] sm:$0xff]  ;;  %v424_v24 = vld [vmem:[#allocation5 + $0x3d8] sm:$0xff] }
  0x72   :  { %1381 = vmatpush1.bf16.msra.mxu1 %v1380_v62  ;;  %v1278_v41 = vpack.c.bf16 %v402_v33, %v398_v32  ;;  %v400_v62 = vld [vmem:[#allocation5 + $0x318] sm:$0xff]  ;;  %v411_v14 = vld [vmem:[#allocation5 + $0x370] sm:$0xff]  ;;  %v429_v48 = vld [vmem:[#allocation5 + $0x400] sm:$0xff] }
  0x73   :  { %1383 = vmatprep.subr.bf16.mxu1 %v1382_v63  ;;  %v415_v19 = vld [vmem:[#allocation5 + $0x390] sm:$0xff]  ;;  %v428_v26 = vld [vmem:[#allocation5 + $0x3f8] sm:$0xff]  ;;  %v433_v49 = vld [vmem:[#allocation5 + $0x420] sm:$0xff] }
  0x74   :  { %1257 = vmatpush1.bf16.msra.mxu0 %v1256_v43  ;;  %v401_v43 = vld [vmem:[#allocation5 + $0x320] sm:$0xff]  ;;  %v419_v20 = vld [vmem:[#allocation5 + $0x3b0] sm:$0xff]  ;;  %v432_v36 = vld [vmem:[#allocation5 + $0x418] sm:$0xff]  ;;  %v1296_v60 = vpack.c.bf16 %v433_v49, %v429_v48 }
  0x75   :  { %1259 = vmatprep.subr.bf16.mxu0 %v1258_v45  ;;  %v410_v45 = vld [vmem:[#allocation5 + $0x368] sm:$0xff]  ;;  %v1280_v51 = vpack.c.bf16 %v401_v43, %v397_v42  ;;  %v1416_v21 = vpack.c.bf16 %v419_v20, %v415_v19  ;;  %v423_v31 = vld [vmem:[#allocation5 + $0x3d0] sm:$0xff]  ;;  %v436_v38 = vld [vmem:[#allocation5 + $0x438] sm:$0xff] }
  0x76   :  { %1385 = vmatpush1.bf16.msra.mxu1 %v1384_v10  ;;  %v1282_v53 = vpack.c.bf16 %v410_v45, %v406_v44  ;;  %v412_v10 = vld [vmem:[#allocation5 + $0x378] sm:$0xff]  ;;  %v427_v32 = vld [vmem:[#allocation5 + $0x3f0] sm:$0xff]  ;;  %v1766_v43 = vld [vmem:[%s1814_s2] sm:$0xf] }
  0x77   :  { %1387 = vmatprep.subr.bf16.mxu1 %v1386_v11  ;;  %v1408_v11 = vpack.c.bf16 %v403_v7, %v399_v6  ;;  %v1410_v12 = vpack.c.bf16 %v412_v10, %v408_v9  ;;  %v1420_v33 = vpack.c.bf16 %v427_v32, %v423_v31  ;;  %v431_v52 = vld [vmem:[#allocation5 + $0x410] sm:$0xff]  ;;  %v450_v7 = vld [vmem:[#allocation5 + $0x4a8] sm:$0xff]  ;;  %v452_v9 = vld [vmem:[#allocation5 + $0x4b8] sm:$0xff] }
  0x78   :  { %1261 = vmatpush1.bf16.msra.mxu0 %v1260_v55  ;;  %v409_v55 = vld [vmem:[#allocation5 + $0x360] sm:$0xff]  ;;  %v458_v20 = vld [vmem:[#allocation5 + $0x4e8] sm:$0xff]  ;;  %v455_v31 = vld [vmem:[#allocation5 + $0x4d0] sm:$0xff] }
  0x79   :  { %1263 = vmatprep.subr.bf16.mxu0 %v1262_v57  ;;  %v418_v57 = vld [vmem:[#allocation5 + $0x3a8] sm:$0xff]  ;;  %v1284_v63 = vpack.c.bf16 %v409_v55, %v405_v54  ;;  %v459_v32 = vld [vmem:[#allocation5 + $0x4f0] sm:$0xff] }
  0x7a   :  { %1389 = vmatpush1.bf16.msra.mxu1 %v1388_v22  ;;  %v1286_v1 = vpack.c.bf16 %v418_v57, %v414_v56  ;;  %v422_v22 = vld [vmem:[#allocation5 + $0x3c8] sm:$0xff]  ;;  %v440_v57 = vld [vmem:[#allocation5 + $0x458] sm:$0xff]  ;;  %v463_v49 = vld [vmem:[#allocation5 + $0x510] sm:$0xff] }
  0x7b   :  { %1391 = vmatprep.subr.bf16.mxu1 %v1390_v23  ;;  %v426_v23 = vld [vmem:[#allocation5 + $0x3e8] sm:$0xff] }
  0x7c   :  { %1265 = vmatpush1.bf16.msra.mxu0 %v1264_v3  ;;  %v417_v3 = vld [vmem:[#allocation5 + $0x3a0] sm:$0xff]  ;;  %v1290_v25 = vpack.c.bf16 %v426_v23, %v422_v22  ;;  %v438_v54 = vld [vmem:[#allocation5 + $0x448] sm:$0xff]  ;;  %v460_v22 = vld [vmem:[#allocation5 + $0x4f8] sm:$0xff] }
  0x7d   :  { %1267 = vmatprep.subr.bf16.mxu0 %v1266_v5  ;;  %v1406_v5 = vpack.c.bf16 %v404_v0, %v400_v62  ;;  %v1288_v8 = vpack.c.bf16 %v417_v3, %v413_v2  ;;  %v442_v56 = vld [vmem:[#allocation5 + $0x468] sm:$0xff]  ;;  %v437_v62 = vld [vmem:[#allocation5 + $0x440] sm:$0xff]  ;;  %v439_v3 = vld [vmem:[#allocation5 + $0x450] sm:$0xff] }
  0x7e   :  { %1393 = vmatpush1.bf16.msra.mxu1 %v1392_v34  ;;  %v430_v34 = vld [vmem:[#allocation5 + $0x408] sm:$0xff] }
  0x7f   :  { %1395 = vmatprep.subr.bf16.mxu1 %v1394_v35  ;;  %v434_v35 = vld [vmem:[#allocation5 + $0x428] sm:$0xff] }
  0x80   :  { %1269 = vmatpush1.bf16.msra.mxu0 %v1268_v15  ;;  %v416_v15 = vld [vmem:[#allocation5 + $0x398] sm:$0xff]  ;;  %v1294_v37 = vpack.c.bf16 %v434_v35, %v430_v34  ;;  %v466_v35 = vld [vmem:[#allocation5 + $0x528] sm:$0xff] }
  0x81   :  { %1271 = vmatprep.subr.bf16.mxu0 %v1270_v17  ;;  %v1412_v17 = vpack.c.bf16 %v411_v14, %v407_v13  ;;  %v1414_v18 = vpack.c.bf16 %v420_v16, %v416_v15  ;;  %v449_v13 = vld [vmem:[#allocation5 + $0x4a0] sm:$0xff]  ;;  %v447_v16 = vld [vmem:[#allocation5 + $0x490] sm:$0xff] }
  0x82   :  { %1397 = vmatpush1.bf16.msra.mxu1 %v1396_v46 }
  0x83   :  { %1399 = vmatprep.subr.bf16.mxu1 %v1398_v47 }
  0x84   :  { %1273 = vmatpush1.bf16.msra.mxu0 %v1272_v27  ;;  %v421_v27 = vld [vmem:[#allocation5 + $0x3c0] sm:$0xff] }
  0x85   :  { %1275 = vmatprep.subr.bf16.mxu0 %v1274_v29  ;;  %v1418_v29 = vpack.c.bf16 %v428_v26, %v424_v24  ;;  %v1292_v30 = vpack.c.bf16 %v425_v28, %v421_v27  ;;  %v453_v26 = vld [vmem:[#allocation5 + $0x4c0] sm:$0xff] }
  0x86   :  { %1401 = vmatpush1.bf16.msra.mxu1 %v1400_v58  ;;  %v444_v58 = vld [vmem:[#allocation5 + $0x478] sm:$0xff]  ;;  %v457_v27 = vld [vmem:[#allocation5 + $0x4e0] sm:$0xff] }
  0x87   :  { %1403 = vmatprep.subr.bf16.mxu1 %v1402_v59  ;;  %v1426_v2 = vpack.c.bf16 %v444_v58, %v440_v57  ;;  %v469_v57 = vld [vmem:[#allocation5 + $0x540] sm:$0xff] }
  0x88   :  { %1277 = vmatpush1.bf16.msra.mxu0 %v1276_v39  ;;  %v1422_v39 = vpack.c.bf16 %v436_v38, %v432_v36  ;;  %v464_v36 = vld [vmem:[#allocation5 + $0x518] sm:$0xff]  ;;  %v473_v58 = vld [vmem:[#allocation5 + $0x560] sm:$0xff] }
  0x89   :  { %1279 = vmatprep.subr.bf16.mxu0 %v1278_v41  ;;  %v1760_v41 = vshrl.u32 %v135_v40, 7  ;;  %v1436_v40 = vpack.c.bf16 %v459_v32, %v455_v31  ;;  %v493_v31 = vld [vmem:[#allocation5 + $0x600] sm:$0xff] }
  0x8a   :  { %1405 = vmatpush1.bf16.msra.mxu1 %v1404_v4  ;;  %v443_v4 = vld [vmem:[#allocation5 + $0x470] sm:$0xff]  ;;  %v497_v32 = vld [vmem:[#allocation5 + $0x620] sm:$0xff] }
  0x8b   :  { %1407 = vmatprep.subr.bf16.mxu1 %v1406_v5  ;;  %v137_v42 = vsub.s32 0, %v1760_v41  ;;  %v141_v44 = vsub.s32 1, %v1760_v41  ;;  %v446_v5 = vld [vmem:[#allocation5 + $0x488] sm:$0xff]  ;;  %v149_v6 = vsub.s32 3, %v1760_v41 }
  0x8c   :  { %1281 = vmatpush1.bf16.msra.mxu0 %v1280_v51  ;;  %v1302_v14 = vpack.c.bf16 %v450_v7, %v446_v5  ;;  %v477_v5 = vld [vmem:[#allocation5 + $0x580] sm:$0xff] }
  0x8d   :  { %1283 = vmatprep.subr.bf16.mxu0 %v1282_v53  ;;  %v138_v45 = vrot.slane %v1766_v43, %v137_v42  ;;  %v142_v46 = vrot.slane %v1766_v43, %v141_v44  ;;  %v435_v53 = vld [vmem:[#allocation5 + $0x430] sm:$0xff]  ;;  %v150_v19 = vrot.slane %v1766_v43, %v149_v6  ;;  %v481_v7 = vld [vmem:[#allocation5 + $0x5a0] sm:$0xff] }
  0x8e   :  { %1409 = vmatpush1.bf16.msra.mxu1 %v1408_v11  ;;  %v1424_v61 = vpack.c.bf16 %v435_v53, %v431_v52  ;;  %v1428_v11 = vpack.c.bf16 %v443_v4, %v439_v3  ;;  %v474_v52 = vld [vmem:[#allocation5 + $0x568] sm:$0xff]  ;;  %v472_v53 = vld [vmem:[#allocation5 + $0x558] sm:$0xff]  ;;  %v1316_v3 = vpack.c.bf16 %v473_v58, %v469_v57 }
  0x8f   :  { %1411 = vmatprep.subr.bf16.mxu1 %v1410_v12  ;;  %v445_v12 = vld [vmem:[#allocation5 + $0x480] sm:$0xff] }
  0x90   :  { %1285 = vmatpush1.bf16.msra.mxu0 %v1284_v63  ;;  %v441_v63 = vld [vmem:[#allocation5 + $0x460] sm:$0xff]  ;;  %v1304_v24 = vpack.c.bf16 %v449_v13, %v445_v12  ;;  %v486_v12 = vld [vmem:[#allocation5 + $0x5c8] sm:$0xff] }
  0x91   :  { %1287 = vmatprep.subr.bf16.mxu0 %v1286_v1  ;;  %v1298_v1 = vpack.c.bf16 %v442_v56, %v438_v54  ;;  %v1300_v10 = vpack.c.bf16 %v441_v63, %v437_v62  ;;  %v476_v54 = vld [vmem:[#allocation5 + $0x578] sm:$0xff]  ;;  %v475_v62 = vld [vmem:[#allocation5 + $0x570] sm:$0xff]  ;;  %v478_v63 = vld [vmem:[#allocation5 + $0x588] sm:$0xff] }
  0x92   :  { %1413 = vmatpush1.bf16.msra.mxu1 %v1412_v17  ;;  %v451_v17 = vld [vmem:[#allocation5 + $0x4b0] sm:$0xff]  ;;  %v490_v13 = vld [vmem:[#allocation5 + $0x5e8] sm:$0xff] }
  0x93   :  { %1415 = vmatprep.subr.bf16.mxu1 %v1414_v18  ;;  %v454_v18 = vld [vmem:[#allocation5 + $0x4c8] sm:$0xff] }
  0x94   :  { %1289 = vmatpush1.bf16.msra.mxu0 %v1288_v8  ;;  %v448_v8 = vld [vmem:[#allocation5 + $0x498] sm:$0xff] }
  0x95   :  { %1291 = vmatprep.subr.bf16.mxu0 %v1290_v25  ;;  %v1430_v15 = vpack.c.bf16 %v452_v9, %v448_v8  ;;  %v1432_v25 = vpack.c.bf16 %v451_v17, %v447_v16  ;;  %v1320_v16 = vpack.c.bf16 %v481_v7, %v477_v5 }
  0x96   :  { %1417 = vmatpush1.bf16.msra.mxu1 %v1416_v21  ;;  %v456_v21 = vld [vmem:[#allocation5 + $0x4d8] sm:$0xff] }
  0x97   :  { %1419 = vmatprep.subr.bf16.mxu1 %v1418_v29  ;;  %v1306_v29 = vpack.c.bf16 %v458_v20, %v454_v18  ;;  %v485_v18 = vld [vmem:[#allocation5 + $0x5c0] sm:$0xff]  ;;  %v1322_v20 = vpack.c.bf16 %v490_v13, %v486_v12  ;;  %v519_v12 = vld [vmem:[#allocation5 + $0x6d0] sm:$0xff] }
  0x98   :  { %1293 = vmatpush1.bf16.msra.mxu0 %v1292_v30  ;;  %v1434_v30 = vpack.c.bf16 %v460_v22, %v456_v21  ;;  %v487_v22 = vld [vmem:[#allocation5 + $0x5d0] sm:$0xff] }
  0x99   :  { %1295 = vmatprep.subr.bf16.mxu0 %v1294_v37  ;;  %v468_v37 = vld [vmem:[#allocation5 + $0x538] sm:$0xff]  ;;  %v523_v13 = vld [vmem:[#allocation5 + $0x6f0] sm:$0xff] }
  0x9a   :  { %1421 = vmatpush1.bf16.msra.mxu1 %v1420_v33  ;;  %v462_v33 = vld [vmem:[#allocation5 + $0x508] sm:$0xff]  ;;  %v1438_v48 = vpack.c.bf16 %v468_v37, %v464_v36  ;;  %v499_v36 = vld [vmem:[#allocation5 + $0x630] sm:$0xff] }
  0x9b   :  { %1423 = vmatprep.subr.bf16.mxu1 %v1422_v39  ;;  %v1308_v39 = vpack.c.bf16 %v457_v27, %v453_v26  ;;  %v498_v26 = vld [vmem:[#allocation5 + $0x628] sm:$0xff]  ;;  %v496_v27 = vld [vmem:[#allocation5 + $0x618] sm:$0xff] }
  0x9c   :  { %v502_v37 = vld [vmem:[#allocation5 + $0x648] sm:$0xff] }
 0x12e   :  { %v221_v47 = vpop.f32.mrb[0].mxu0 }
 0x12f   :  { %v222_v50 = vadd.f32 %v221_v47, %v138_v45  ;;  %v223_v51 = vpop.f32.mrb[1].mxu0  ;;  %v461_v45 = vld [vmem:[#allocation5 + $0x500] sm:$0xff]  ;;  %v1310_v47 = vpack.c.bf16 %v466_v35, %v462_v33  ;;  %v495_v35 = vld [vmem:[#allocation5 + $0x610] sm:$0xff] }
 0x130   :  { %v224_v55 = vadd.f32 %v223_v51, %v142_v46  ;;  %v1779_v23 = vpop.f32.mrb[0].mxu1  ;;  %v465_v46 = vld [vmem:[#allocation5 + $0x520] sm:$0xff]  ;;  %v470_v51 = vld [vmem:[#allocation5 + $0x548] sm:$0xff] }
 0x131   :  { %v297_v0 = vmax.f32 %v222_v50, 0.0  ;;  %v294_v28 = vpop.f32.mrb[1].mxu1  ;;  %v467_v50 = vld [vmem:[#allocation5 + $0x530] sm:$0xff] }
 0x132   :  { %v298_v59 = vmax.f32 %v224_v55, 0.0  ;;  %v295_v34 = vadd.f32 %v294_v28, %v150_v19  ;;  %v1312_v55 = vpack.c.bf16 %v465_v46, %v461_v45  ;;  %v1440_v56 = vpack.c.bf16 %v467_v50, %v463_v49  ;;  %v489_v19 = vld [vmem:[#allocation5 + $0x5e0] sm:$0xff]  ;;  %v500_v28 = vld [vmem:[#allocation5 + $0x638] sm:$0xff] }
 0x133   :  { %v1328_v45 = vpack.c.bf16 %v497_v32, %v493_v31  ;;  %v1456_v46 = vpack.c.bf16 %v499_v36, %v495_v35 }
 0x134   :  { %643 = vmatprep.mubr.f32.mxu0 %v298_v59  ;;  %785 = vmatprep.mubr.f32.mxu1 %v298_v59  ;;  %v300_v38 = vmax.f32 %v295_v34, 0.0  ;;  %v1314_v59 = vpack.c.bf16 %v474_v52, %v470_v51  ;;  %v1454_v34 = vpack.c.bf16 %v500_v28, %v496_v27  ;;  %v503_v51 = vld [vmem:[#allocation5 + $0x650] sm:$0xff]  ;;  %v534_v27 = vld [vmem:[#allocation5 + $0x748] sm:$0xff] }
 0x135   :  { %644 = vmatmul.mubr.f32.vlgmr.msra.gmra.mrb[2].mxu0 %v297_v0  ;;  %786 = vmatmul.mubr.f32.vlgmr.msra.gmra.mrb[2].mxu1 %v297_v0  ;;  %v482_v0 = vld [vmem:[#allocation5 + $0x5a8] sm:$0xff]  ;;  %v507_v52 = vld [vmem:[#allocation5 + $0x670] sm:$0xff] }
 0x136   :  { %1297 = vmatpush1.bf16.msra.mxu0 %v1296_v60  ;;  %1425 = vmatpush1.bf16.msra.mxu1 %v1424_v61  ;;  %v1442_v60 = vpack.c.bf16 %v476_v54, %v472_v53  ;;  %v471_v61 = vld [vmem:[#allocation5 + $0x550] sm:$0xff]  ;;  %v1318_v8 = vpack.c.bf16 %v482_v0, %v478_v63  ;;  %v510_v53 = vld [vmem:[#allocation5 + $0x688] sm:$0xff]  ;;  %v1460_v58 = vpack.c.bf16 %v507_v52, %v503_v51  ;;  %v145_v51 = vsub.s32 2, %v1760_v41  ;;  %v1095_v41 = vld [vmem:[%s1818_s6] ss:$0 sm:$0xff] }
 0x137   :  { %1299 = vmatprep.subr.bf16.mxu0 %v1298_v1  ;;  %1427 = vmatprep.subr.bf16.mxu1 %v1426_v2  ;;  %v480_v1 = vld [vmem:[#allocation5 + $0x598] sm:$0xff]  ;;  %v1444_v4 = vpack.c.bf16 %v475_v62, %v471_v61  ;;  %v514_v54 = vld [vmem:[#allocation5 + $0x6a8] sm:$0xff]  ;;  %v511_v63 = vld [vmem:[#allocation5 + $0x690] sm:$0xff] }
 0x138   :  { %714 = vmatprep.mubr.f32.mxu0 %v300_v38  ;;  %856 = vmatprep.mubr.f32.mxu1 %v300_v38  ;;  %v484_v2 = vld [vmem:[#allocation5 + $0x5b8] sm:$0xff]  ;;  %v506_v38 = vld [vmem:[#allocation5 + $0x668] sm:$0xff]  ;;  %v1334_v61 = vpack.c.bf16 %v514_v54, %v510_v53  ;;  %v515_v0 = vld [vmem:[#allocation5 + $0x6b0] sm:$0xff] }
 0x139   :  { %v1446_v9 = vpack.c.bf16 %v484_v2, %v480_v1  ;;  %v1330_v49 = vpack.c.bf16 %v506_v38, %v502_v37  ;;  %v518_v1 = vld [vmem:[#allocation5 + $0x6c8] sm:$0xff]  ;;  %v1464_v7 = vpack.c.bf16 %v515_v0, %v511_v63  ;;  %v535_v37 = vld [vmem:[#allocation5 + $0x750] sm:$0xff]  ;;  %v553_v63 = vld [vmem:[#allocation5 + $0x7e0] sm:$0xff]  ;;  %v146_v0 = vrot.slane %v1766_v43, %v145_v51 }
 0x13a   :  { %1301 = vmatpush1.bf16.msra.mxu0 %v1300_v10  ;;  %1429 = vmatpush1.bf16.msra.mxu1 %v1428_v11  ;;  %v479_v10 = vld [vmem:[#allocation5 + $0x590] sm:$0xff]  ;;  %v522_v2 = vld [vmem:[#allocation5 + $0x6e8] sm:$0xff] }
 0x13b   :  { %1303 = vmatprep.subr.bf16.mxu0 %v1302_v14  ;;  %1431 = vmatprep.subr.bf16.mxu1 %v1430_v15  ;;  %v483_v11 = vld [vmem:[#allocation5 + $0x5b0] sm:$0xff]  ;;  %v488_v14 = vld [vmem:[#allocation5 + $0x5d8] sm:$0xff]  ;;  %v538_v28 = vld [vmem:[#allocation5 + $0x768] sm:$0xff] }
 0x13c   :  { %v492_v15 = vld [vmem:[#allocation5 + $0x5f8] sm:$0xff]  ;;  %v1448_v17 = vpack.c.bf16 %v483_v11, %v479_v10  ;;  %v1338_v10 = vpack.c.bf16 %v522_v2, %v518_v1  ;;  %v1346_v35 = vpack.c.bf16 %v538_v28, %v534_v27  ;;  %v539_v38 = vld [vmem:[#allocation5 + $0x770] sm:$0xff] }
 0x13d   :  { %v1450_v21 = vpack.c.bf16 %v492_v15, %v488_v14  ;;  %v526_v14 = vld [vmem:[#allocation5 + $0x708] sm:$0xff]  ;;  %v543_v54 = vld [vmem:[#allocation5 + $0x790] sm:$0xff] }
 0x13e   :  { %1305 = vmatpush1.bf16.msra.mxu0 %v1304_v24  ;;  %1433 = vmatpush1.bf16.msra.mxu1 %v1432_v25  ;;  %v491_v24 = vld [vmem:[#allocation5 + $0x5f0] sm:$0xff]  ;;  %v494_v25 = vld [vmem:[#allocation5 + $0x608] sm:$0xff] }
 0x13f   :  { %1307 = vmatprep.subr.bf16.mxu0 %v1306_v29  ;;  %1435 = vmatprep.subr.bf16.mxu1 %v1434_v30  ;;  %v1324_v29 = vpack.c.bf16 %v489_v19, %v485_v18  ;;  %v1452_v30 = vpack.c.bf16 %v491_v24, %v487_v22  ;;  %v1326_v33 = vpack.c.bf16 %v498_v26, %v494_v25  ;;  %v530_v15 = vld [vmem:[#allocation5 + $0x728] sm:$0xff]  ;;  %v527_v25 = vld [vmem:[#allocation5 + $0x710] sm:$0xff] }
 0x140   :  { %v1468_v19 = vpack.c.bf16 %v523_v13, %v519_v12  ;;  %v1342_v22 = vpack.c.bf16 %v530_v15, %v526_v14  ;;  %v531_v26 = vld [vmem:[#allocation5 + $0x730] sm:$0xff]  ;;  %v867_v12 = vld [vmem:[#allocation7] sm:$0xff]  ;;  %v868_v13 = vld [vmem:[#allocation7 + $0x8] sm:$0xff]  ;;  %v293_v14 = vadd.f32 %v1779_v23, %v146_v0 }
 0x141   :  { %v1472_v32 = vpack.c.bf16 %v531_v26, %v527_v25  ;;  %v869_v25 = vld [vmem:[#allocation7 + $0x10] sm:$0xff]  ;;  %v870_v26 = vld [vmem:[#allocation7 + $0x18] sm:$0xff] }
 0x142   :  { %1309 = vmatpush1.bf16.msra.mxu0 %v1308_v39  ;;  %1437 = vmatpush1.bf16.msra.mxu1 %v1436_v40  ;;  %v504_v39 = vld [vmem:[#allocation5 + $0x658] sm:$0xff]  ;;  %v299_v27 = vmax.f32 %v293_v14, 0.0 }
 0x143   :  { %1311 = vmatprep.subr.bf16.mxu0 %v1310_v47  ;;  %1439 = vmatprep.subr.bf16.mxu1 %v1438_v48  ;;  %v508_v40 = vld [vmem:[#allocation5 + $0x678] sm:$0xff]  ;;  %v501_v47 = vld [vmem:[#allocation5 + $0x640] sm:$0xff] }
 0x144   :  { %v505_v48 = vld [vmem:[#allocation5 + $0x660] sm:$0xff]  ;;  %v1458_v50 = vpack.c.bf16 %v508_v40, %v504_v39  ;;  %v542_v39 = vld [vmem:[#allocation5 + $0x788] sm:$0xff] }
 0x145   :  { %v1332_v57 = vpack.c.bf16 %v505_v48, %v501_v47  ;;  %v546_v40 = vld [vmem:[#allocation5 + $0x7a8] sm:$0xff]  ;;  %v1476_v48 = vpack.c.bf16 %v539_v38, %v535_v37  ;;  %v871_v37 = vld [vmem:[#allocation7 + $0x20] sm:$0xff] }
 0x146   :  { %1313 = vmatpush1.bf16.msra.mxu0 %v1312_v55  ;;  %1441 = vmatpush1.bf16.msra.mxu1 %v1440_v56  ;;  %v512_v55 = vld [vmem:[#allocation5 + $0x698] sm:$0xff]  ;;  %v1350_v52 = vpack.c.bf16 %v546_v40, %v542_v39  ;;  %v872_v38 = vld [vmem:[#allocation7 + $0x28] sm:$0xff] }
 0x147   :  { %1315 = vmatprep.subr.bf16.mxu0 %v1314_v59  ;;  %1443 = vmatprep.subr.bf16.mxu1 %v1442_v60  ;;  %v516_v56 = vld [vmem:[#allocation5 + $0x6b8] sm:$0xff]  ;;  %v509_v59 = vld [vmem:[#allocation5 + $0x680] sm:$0xff] }
 0x148   :  { %v513_v60 = vld [vmem:[#allocation5 + $0x6a0] sm:$0xff]  ;;  %v1462_v62 = vpack.c.bf16 %v516_v56, %v512_v55  ;;  %v547_v55 = vld [vmem:[#allocation5 + $0x7b0] sm:$0xff]  ;;  %v550_v56 = vld [vmem:[#allocation5 + $0x7c8] sm:$0xff] }
 0x149   :  { %v1336_v5 = vpack.c.bf16 %v513_v60, %v509_v59  ;;  %v556_v59 = vld [vmem:[#allocation5 + $0x7f8] sm:$0xff] }
 0x14a   :  { %1317 = vmatpush1.bf16.msra.mxu0 %v1316_v3  ;;  %1445 = vmatpush1.bf16.msra.mxu1 %v1444_v4  ;;  %v520_v3 = vld [vmem:[#allocation5 + $0x6d8] sm:$0xff] }
 0x14b   :  { %1319 = vmatprep.subr.bf16.mxu0 %v1318_v8  ;;  %1447 = vmatprep.subr.bf16.mxu1 %v1446_v9  ;;  %v524_v4 = vld [vmem:[#allocation5 + $0x6f8] sm:$0xff]  ;;  %v517_v8 = vld [vmem:[#allocation5 + $0x6c0] sm:$0xff] }
 0x14c   :  { %v521_v9 = vld [vmem:[#allocation5 + $0x6e0] sm:$0xff]  ;;  %v1466_v11 = vpack.c.bf16 %v524_v4, %v520_v3  ;;  %v551_v3 = vld [vmem:[#allocation5 + $0x7d0] sm:$0xff] }
 0x14d   :  { %v1340_v18 = vpack.c.bf16 %v521_v9, %v517_v8  ;;  %v555_v4 = vld [vmem:[#allocation5 + $0x7f0] sm:$0xff]  ;;  %v915_v8 = vld [vmem:[#allocation7 + $0x180] sm:$0xff]  ;;  %v916_v9 = vld [vmem:[#allocation7 + $0x188] sm:$0xff] }
 0x14e   :  { %1321 = vmatpush1.bf16.msra.mxu0 %v1320_v16  ;;  %1449 = vmatpush1.bf16.msra.mxu1 %v1448_v17  ;;  %v528_v16 = vld [vmem:[#allocation5 + $0x718] sm:$0xff]  ;;  %v1518_v15 = vpack.c.bf16 %v916_v9, %v915_v8  ;;  %v908_v8 = vld [vmem:[#allocation7 + $0x148] sm:$0xff]  ;;  %v893_v9 = vld [vmem:[#allocation7 + $0xd0] sm:$0xff] }
 0x14f   :  { %1323 = vmatprep.subr.bf16.mxu0 %v1322_v20  ;;  %1451 = vmatprep.subr.bf16.mxu1 %v1450_v21  ;;  %v532_v17 = vld [vmem:[#allocation5 + $0x738] sm:$0xff]  ;;  %v525_v20 = vld [vmem:[#allocation5 + $0x700] sm:$0xff] }
 0x150   :  { %v529_v21 = vld [vmem:[#allocation5 + $0x720] sm:$0xff]  ;;  %v1470_v24 = vpack.c.bf16 %v532_v17, %v528_v16  ;;  %v900_v17 = vld [vmem:[#allocation7 + $0x108] sm:$0xff] }
 0x151   :  { %v1344_v31 = vpack.c.bf16 %v529_v21, %v525_v20  ;;  %v899_v16 = vld [vmem:[#allocation7 + $0x100] sm:$0xff]  ;;  %v917_v20 = vld [vmem:[#allocation7 + $0x190] sm:$0xff]  ;;  %v918_v21 = vld [vmem:[#allocation7 + $0x198] sm:$0xff] }
 0x152   :  { %1325 = vmatpush1.bf16.msra.mxu0 %v1324_v29  ;;  %1453 = vmatpush1.bf16.msra.mxu1 %v1452_v30  ;;  %v536_v29 = vld [vmem:[#allocation5 + $0x758] sm:$0xff]  ;;  %v1522_v28 = vpack.c.bf16 %v918_v21, %v917_v20  ;;  %v895_v20 = vld [vmem:[#allocation7 + $0xe0] sm:$0xff]  ;;  %v896_v21 = vld [vmem:[#allocation7 + $0xe8] sm:$0xff] }
 0x153   :  { %1327 = vmatprep.subr.bf16.mxu0 %v1326_v33  ;;  %1455 = vmatprep.subr.bf16.mxu1 %v1454_v34  ;;  %v540_v30 = vld [vmem:[#allocation5 + $0x778] sm:$0xff]  ;;  %v533_v33 = vld [vmem:[#allocation5 + $0x740] sm:$0xff] }
 0x154   :  { %v537_v34 = vld [vmem:[#allocation5 + $0x760] sm:$0xff]  ;;  %v1474_v36 = vpack.c.bf16 %v540_v30, %v536_v29  ;;  %v901_v29 = vld [vmem:[#allocation7 + $0x110] sm:$0xff]  ;;  %v902_v30 = vld [vmem:[#allocation7 + $0x118] sm:$0xff] }
 0x155   :  { %v1348_v47 = vpack.c.bf16 %v537_v34, %v533_v33  ;;  %v919_v33 = vld [vmem:[#allocation7 + $0x1a0] sm:$0xff]  ;;  %v920_v34 = vld [vmem:[#allocation7 + $0x1a8] sm:$0xff] }
 0x156   :  { %1329 = vmatpush1.bf16.msra.mxu0 %v1328_v45  ;;  %1457 = vmatpush1.bf16.msra.mxu1 %v1456_v46  ;;  %v544_v45 = vld [vmem:[#allocation5 + $0x798] sm:$0xff]  ;;  %v1526_v40 = vpack.c.bf16 %v920_v34, %v919_v33  ;;  %v897_v34 = vld [vmem:[#allocation7 + $0xf0] sm:$0xff] }
 0x157   :  { %1331 = vmatprep.subr.bf16.mxu0 %v1330_v49  ;;  %1459 = vmatprep.subr.bf16.mxu1 %v1458_v50  ;;  %v548_v46 = vld [vmem:[#allocation5 + $0x7b8] sm:$0xff]  ;;  %v541_v49 = vld [vmem:[#allocation5 + $0x780] sm:$0xff] }
 0x158   :  { %v545_v50 = vld [vmem:[#allocation5 + $0x7a0] sm:$0xff]  ;;  %v1478_v53 = vpack.c.bf16 %v548_v46, %v544_v45  ;;  %v904_v46 = vld [vmem:[#allocation7 + $0x128] sm:$0xff] }
 0x159   :  { %v1352_v60 = vpack.c.bf16 %v545_v50, %v541_v49  ;;  %v903_v45 = vld [vmem:[#allocation7 + $0x120] sm:$0xff]  ;;  %v921_v49 = vld [vmem:[#allocation7 + $0x1b0] sm:$0xff]  ;;  %v922_v50 = vld [vmem:[#allocation7 + $0x1b8] sm:$0xff] }
 0x15a   :  { %1333 = vmatpush1.bf16.msra.mxu0 %v1332_v57  ;;  %1461 = vmatpush1.bf16.msra.mxu1 %v1460_v58  ;;  %v554_v57 = vld [vmem:[#allocation5 + $0x7e8] sm:$0xff]  ;;  %v552_v58 = vld [vmem:[#allocation5 + $0x7d8] sm:$0xff] }
 0x15b   :  { %1335 = vmatprep.subr.bf16.mxu0 %v1334_v61  ;;  %1463 = vmatprep.subr.bf16.mxu1 %v1462_v62  ;;  %v1480_v61 = vpack.c.bf16 %v547_v55, %v543_v54  ;;  %v549_v62 = vld [vmem:[#allocation5 + $0x7c0] sm:$0xff]  ;;  %v1354_v1 = vpack.c.bf16 %v554_v57, %v550_v56  ;;  %v1482_v2 = vpack.c.bf16 %v556_v59, %v552_v58  ;;  %v873_v54 = vld [vmem:[#allocation7 + $0x30] sm:$0xff]  ;;  %v874_v55 = vld [vmem:[#allocation7 + $0x38] sm:$0xff] }
 0x15c   :  { %v1530_v57 = vpack.c.bf16 %v922_v50, %v921_v49  ;;  %v905_v58 = vld [vmem:[#allocation7 + $0x130] sm:$0xff]  ;;  %v906_v59 = vld [vmem:[#allocation7 + $0x138] sm:$0xff]  ;;  %v1500_v0 = vpack.c.bf16 %v874_v55, %v873_v54  ;;  %v557_v50 = vld [vmem:[%s1816_s4] sm:$0xf] }
 0x15d   :  { %v566_v54 = vrot.slane %v557_v50, %v141_v44  ;;  %v574_v55 = vrot.slane %v557_v50, %v149_v6 }
 0x15e   :  { %1337 = vmatpush1.bf16.msra.mxu0 %v1336_v5  ;;  %1465 = vmatpush1.bf16.msra.mxu1 %v1464_v7  ;;  %v883_v5 = vld [vmem:[#allocation7 + $0x80] sm:$0xff]  ;;  %v884_v7 = vld [vmem:[#allocation7 + $0x88] sm:$0xff] }
 0x15f   :  { %1339 = vmatprep.subr.bf16.mxu0 %v1338_v10  ;;  %1467 = vmatprep.subr.bf16.mxu1 %v1466_v11  ;;  %v1356_v10 = vpack.c.bf16 %v553_v63, %v549_v62  ;;  %v1484_v11 = vpack.c.bf16 %v555_v4, %v551_v3  ;;  %v1486_v43 = vpack.c.bf16 %v884_v7, %v883_v5  ;;  %v923_v62 = vld [vmem:[#allocation7 + $0x1c0] sm:$0xff]  ;;  %v924_v63 = vld [vmem:[#allocation7 + $0x1c8] sm:$0xff] }
 0x160   :  { %v876_v3 = vld [vmem:[#allocation7 + $0x48] sm:$0xff]  ;;  %v1534_v5 = vpack.c.bf16 %v924_v63, %v923_v62  ;;  %v907_v7 = vld [vmem:[#allocation7 + $0x140] sm:$0xff] }
 0x161   :  { %v1536_v14 = vpack.c.bf16 %v908_v8, %v907_v7 }
 0x162   :  { %1341 = vmatpush1.bf16.msra.mxu0 %v1340_v18  ;;  %1469 = vmatpush1.bf16.msra.mxu1 %v1468_v19  ;;  %v885_v18 = vld [vmem:[#allocation7 + $0x90] sm:$0xff]  ;;  %v886_v19 = vld [vmem:[#allocation7 + $0x98] sm:$0xff] }
 0x163   :  { %1343 = vmatprep.subr.bf16.mxu0 %v1342_v22  ;;  %1471 = vmatprep.subr.bf16.mxu1 %v1470_v24  ;;  %v1488_v22 = vpack.c.bf16 %v868_v13, %v867_v12  ;;  %v1520_v24 = vpack.c.bf16 %v900_v17, %v899_v16  ;;  %v1490_v23 = vpack.c.bf16 %v886_v19, %v885_v18  ;;  %v926_v12 = vld [vmem:[#allocation7 + $0x1d8] sm:$0xff]  ;;  %v909_v18 = vld [vmem:[#allocation7 + $0x150] sm:$0xff] }
 0x164   :  { %v910_v19 = vld [vmem:[#allocation7 + $0x158] sm:$0xff] }
 0x166   :  { %1345 = vmatpush1.bf16.msra.mxu0 %v1344_v31  ;;  %1473 = vmatpush1.bf16.msra.mxu1 %v1472_v32  ;;  %v887_v31 = vld [vmem:[#allocation7 + $0xa0] sm:$0xff]  ;;  %v888_v32 = vld [vmem:[#allocation7 + $0xa8] sm:$0xff] }
 0x167   :  { %1347 = vmatprep.subr.bf16.mxu0 %v1346_v35  ;;  %1475 = vmatprep.subr.bf16.mxu1 %v1474_v36  ;;  %v1492_v35 = vpack.c.bf16 %v870_v26, %v869_v25  ;;  %v1524_v36 = vpack.c.bf16 %v902_v30, %v901_v29  ;;  %v1494_v39 = vpack.c.bf16 %v888_v32, %v887_v31  ;;  %v880_v29 = vld [vmem:[#allocation7 + $0x68] sm:$0xff]  ;;  %v911_v30 = vld [vmem:[#allocation7 + $0x160] sm:$0xff] }
 0x168   :  { %v1540_v26 = vpack.c.bf16 %v910_v19, %v909_v18  ;;  %v912_v32 = vld [vmem:[#allocation7 + $0x168] sm:$0xff] }
 0x169   :  { %v1544_v33 = vpack.c.bf16 %v912_v32, %v911_v30 }
 0x16a   :  { %1349 = vmatpush1.bf16.msra.mxu0 %v1348_v47  ;;  %1477 = vmatpush1.bf16.msra.mxu1 %v1476_v48  ;;  %v889_v47 = vld [vmem:[#allocation7 + $0xb0] sm:$0xff]  ;;  %v890_v48 = vld [vmem:[#allocation7 + $0xb8] sm:$0xff] }
 0x16b   :  { %1351 = vmatprep.subr.bf16.mxu0 %v1350_v52  ;;  %1479 = vmatprep.subr.bf16.mxu1 %v1478_v53  ;;  %v1496_v52 = vpack.c.bf16 %v872_v38, %v871_v37  ;;  %v1528_v53 = vpack.c.bf16 %v904_v46, %v903_v45  ;;  %v1498_v56 = vpack.c.bf16 %v890_v48, %v889_v47  ;;  %v930_v38 = vld [vmem:[#allocation7 + $0x1f8] sm:$0xff]  ;;  %v913_v47 = vld [vmem:[#allocation7 + $0x170] sm:$0xff] }
 0x16c   :  { %v914_v48 = vld [vmem:[#allocation7 + $0x178] sm:$0xff] }
 0x16d   :  { %v1548_v49 = vpack.c.bf16 %v914_v48, %v913_v47 }
 0x16e   :  { %1353 = vmatpush1.bf16.msra.mxu0 %v1352_v60  ;;  %1481 = vmatpush1.bf16.msra.mxu1 %v1480_v61  ;;  %v891_v60 = vld [vmem:[#allocation7 + $0xc0] sm:$0xff]  ;;  %v892_v61 = vld [vmem:[#allocation7 + $0xc8] sm:$0xff] }
 0x16f   :  { %1355 = vmatprep.subr.bf16.mxu0 %v1354_v1  ;;  %1483 = vmatprep.subr.bf16.mxu1 %v1482_v2  ;;  %v1532_v1 = vpack.c.bf16 %v906_v59, %v905_v58  ;;  %v875_v2 = vld [vmem:[#allocation7 + $0x40] sm:$0xff]  ;;  %v1502_v4 = vpack.c.bf16 %v892_v61, %v891_v60 }
 0x170   :  { %v1504_v13 = vpack.c.bf16 %v876_v3, %v875_v2 }
 0x172   :  { %1357 = vmatpush1.bf16.msra.mxu0 %v1356_v10  ;;  %1485 = vmatpush1.bf16.msra.mxu1 %v1484_v11  ;;  %v894_v10 = vld [vmem:[#allocation7 + $0xd8] sm:$0xff]  ;;  %v925_v11 = vld [vmem:[#allocation7 + $0x1d0] sm:$0xff] }
 0x173   :  { %1487 = vmatprep.subr.bf16.mxu0 %v1486_v43  ;;  %1519 = vmatprep.subr.bf16.mxu1 %v1518_v15  ;;  %v877_v43 = vld [vmem:[#allocation7 + $0x50] sm:$0xff]  ;;  %v878_v15 = vld [vmem:[#allocation7 + $0x58] sm:$0xff]  ;;  %v1506_v16 = vpack.c.bf16 %v894_v10, %v893_v9  ;;  %v1538_v17 = vpack.c.bf16 %v926_v12, %v925_v11 }
 0x174   :  { %v1508_v25 = vpack.c.bf16 %v878_v15, %v877_v43 }
 0x175   :  { %715 = vmatmul.mubr.f32.vlgmr.msra.gmra.mrb[2].mxu0 %v299_v27  ;;  %857 = vmatmul.mubr.f32.vlgmr.msra.gmra.mrb[2].mxu1 %v299_v27  ;;  %v1510_v27 = vpack.c.bf16 %v896_v21, %v895_v20 }
 0x176   :  { %1489 = vmatpush3.bf16.msra.mxu0 %v1488_v22  ;;  %1521 = vmatpush3.bf16.msra.mxu1 %v1520_v24  ;;  %v927_v22 = vld [vmem:[#allocation7 + $0x1e0] sm:$0xff]  ;;  %v928_v24 = vld [vmem:[#allocation7 + $0x1e8] sm:$0xff] }
 0x177   :  { %1491 = vmatprep.subr.bf16.mxu0 %v1490_v23  ;;  %1523 = vmatprep.subr.bf16.mxu1 %v1522_v28  ;;  %v1542_v23 = vpack.c.bf16 %v928_v24, %v927_v22  ;;  %v879_v28 = vld [vmem:[#allocation7 + $0x60] sm:$0xff] }
 0x178   :  { %v1512_v31 = vpack.c.bf16 %v880_v29, %v879_v28 }
 0x17a   :  { %1493 = vmatpush3.bf16.msra.mxu0 %v1492_v35  ;;  %1525 = vmatpush3.bf16.msra.mxu1 %v1524_v36  ;;  %v898_v35 = vld [vmem:[#allocation7 + $0xf8] sm:$0xff]  ;;  %v929_v36 = vld [vmem:[#allocation7 + $0x1f0] sm:$0xff] }
 0x17b   :  { %1495 = vmatprep.subr.bf16.mxu0 %v1494_v39  ;;  %1527 = vmatprep.subr.bf16.mxu1 %v1526_v40  ;;  %v1514_v37 = vpack.c.bf16 %v898_v35, %v897_v34  ;;  %v881_v39 = vld [vmem:[#allocation7 + $0x70] sm:$0xff]  ;;  %v882_v40 = vld [vmem:[#allocation7 + $0x78] sm:$0xff]  ;;  %v1546_v45 = vpack.c.bf16 %v930_v38, %v929_v36 }
 0x17c   :  { %v1516_v46 = vpack.c.bf16 %v882_v40, %v881_v39 }
 0x17e   :  { %1497 = vmatpush3.bf16.msra.mxu0 %v1496_v52  ;;  %1529 = vmatpush3.bf16.msra.mxu1 %v1528_v53  ;;  %v562_v52 = vrot.slane %v557_v50, %v137_v42  ;;  %v570_v53 = vrot.slane %v557_v50, %v145_v51 }
 0x17f   :  { %1499 = vmatprep.subr.bf16.mxu0 %v1498_v56  ;;  %1531 = vmatprep.subr.bf16.mxu1 %v1530_v57 }
 0x182   :  { %1501 = vmatpush3.bf16.msra.mxu0 %v1500_v0  ;;  %1533 = vmatpush3.bf16.msra.mxu1 %v1532_v1 }
 0x183   :  { %1503 = vmatprep.subr.bf16.mxu0 %v1502_v4  ;;  %1535 = vmatprep.subr.bf16.mxu1 %v1534_v5 }
 0x186   :  { %1505 = vmatpush3.bf16.msra.mxu0 %v1504_v13  ;;  %1537 = vmatpush3.bf16.msra.mxu1 %v1536_v14 }
 0x187   :  { %1507 = vmatprep.subr.bf16.mxu0 %v1506_v16  ;;  %1539 = vmatprep.subr.bf16.mxu1 %v1538_v17 }
 0x18a   :  { %1509 = vmatpush3.bf16.msra.mxu0 %v1508_v25  ;;  %1541 = vmatpush3.bf16.msra.mxu1 %v1540_v26 }
 0x18b   :  { %1511 = vmatprep.subr.bf16.mxu0 %v1510_v27  ;;  %1543 = vmatprep.subr.bf16.mxu1 %v1542_v23 }
 0x18e   :  { %1513 = vmatpush3.bf16.msra.mxu0 %v1512_v31  ;;  %1545 = vmatpush3.bf16.msra.mxu1 %v1544_v33 }
 0x18f   :  { %1515 = vmatprep.subr.bf16.mxu0 %v1514_v37  ;;  %1547 = vmatprep.subr.bf16.mxu1 %v1546_v45 }
 0x192   :  { %1517 = vmatpush3.bf16.msra.mxu0 %v1516_v46  ;;  %1549 = vmatpush3.bf16.msra.mxu1 %v1548_v49 }
 0x248   :  { %v716_v56 = vpop.f32.mrb[2].mxu0  ;;  %v858_v57 = vpop.f32.mrb[2].mxu1 }
 0x249   :  { %v1550_v58 = vadd.f32 %v716_v56, %v562_v52  ;;  %v1552_v59 = vadd.f32 %v858_v57, %v570_v53  ;;  %v718_v60 = vpop.f32.mrb[3].mxu0  ;;  %v860_v61 = vpop.f32.mrb[3].mxu1 }
 0x24a   :  { %v1551_v62 = vadd.f32 %v718_v60, %v566_v54  ;;  %v1553_v63 = vadd.f32 %v860_v61, %v574_v55 }
 0x24b   :  { %v863_v42 = vmax.f32 %v1550_v58, 0.0  ;;  %v865_v2 = vmax.f32 %v1552_v59, 0.0 }
 0x24c   :  { %v864_v0 = vmax.f32 %v1551_v62, 0.0  ;;  %v866_v1 = vmax.f32 %v1553_v63, 0.0 }
 0x24e   :  { %1002 = vmatprep.mubr.f32.mxu0 %v864_v0  ;;  %1072 = vmatprep.mubr.f32.mxu1 %v866_v1 }
 0x24f   :  { %1003 = vmatmul.mubr.f32.vlgmr.msra.gmra.mrb[4].mxu0 %v863_v42  ;;  %1073 = vmatmul.mubr.f32.vlgmr.msra.gmra.mrb[4].mxu1 %v865_v2 }
 0x322   :  { %v1128_v44 = vpop.f32.mrb[4].mxu0  ;;  %v1163_v51 = vpop.f32.mrb[4].mxu1 }
 0x323   :  { %v1129_v6 = vpop.f32.mrb[5].mxu0  ;;  %v1164_v3 = vpop.f32.mrb[5].mxu1 }
 0x324   :  { %v1130_v4 = vadd.f32 %v1129_v6, %v1128_v44  ;;  %v1165_v5 = vadd.f32 %v1164_v3, %v1163_v51 }
 0x326   :  { %v1005_v7 = vadd.f32 %v1130_v4, %v1095_v41 }
 0x328   :  { %v1075_v8 = vadd.f32 %v1165_v5, %v1005_v7 }
 0x32a   :  { %1078 = vst [vmem:[#allocation8] sm:$0xff] %v1075_v8 }
 0x32b   :  { %1644 = shalt.err (!%p1641_p0)
}
 0x32c   :  { %s1645_s6 = scalar_lea.hbm %s1819_s7, 128 }
 0x32d   :  { %p1646_p1 = scmp.ne.s32.totalorder %s1819_s7, %s1645_s6  ;;  %p1649_p2 = scmp.lt.u32.totalorder %s1645_s6, %s1819_s7 }
 0x32f   :  { %p1651_p3 = pnand %p1649_p2, %p1646_p1 }
 0x331   :  { %1654 = shalt.err (!%p1651_p3)
}
 0x332   :  { %1088 = dma.vmem_to_hbm [thread:$0]  %s1086_s21, 128, %s1819_s7, [#allocation4]  }
 0x333   :  { %1659 = dma.done.wait [#allocation4], 128  }
 0x334   :  { %1660 = vsyncadd [#allocation4], 4294967168 }
 0x335   :  { %1092 = vsyncpa [#allocation3], 1 }
 0x336   :  { %1093 = vsyncpa [#allocation6], 1 }
 0x337   :  { %1094 = vsyncpa [#allocation4], 1 }

</bundles_post_ra>
